<compile_context>
chip_gen: v5e
topology: v5e:2x2
jax: 0.10.0
libtpu: 0.0.40
codegen_flags: <defaults>
</compile_context>

<pallas_src>
import functools

import jax
import jax.numpy as jnp
from jax import lax
from jax.experimental import pallas as pl
from jax.experimental.pallas import tpu as pltpu


# ----------------------------- helpers ------------------------------------

def _round_up(n, m):
    return ((n + m - 1) // m) * m


def _pad2(a, rows, cols):
    pr, pc = rows - a.shape[0], cols - a.shape[1]
    if pr or pc:
        a = jnp.pad(a, ((0, pr), (0, pc)))
    return a


def _vmem_capacity_bytes():
    """Per-core VMEM capacity; conservative fallback if the query fails."""
    try:
        info = pltpu.get_tpu_info()
        cap = int(getattr(info, "vmem_capacity_bytes", 0) or 0)
        if cap > 0:
            return cap
    except Exception:
        pass
    return 64 * 1024 * 1024  # v7x has the smallest VMEM -> always-safe default


def _working_set_bytes(tb, tl, dp):
    """Approx. VMEM footprint of one grid step incl. double buffering."""
    dbuf = 2
    ins = tb * dp * 2 + tl * dp * 2 + tl * 4 + dp * tl * 2 + dp * 4
    outs = tb * dp * 4 + tb * tl * 2
    return dbuf * (ins + outs)


_TB_CANDIDATES = (1024, 768, 512, 384, 256, 128, 64, 32, 16)


def _choose_tiles(B, Dp, Lp, vmem_budget, tb=None, tl=None):
    Bq = _round_up(max(B, 1), 16)

    # Largest TB first (bigger TB amortizes weight streaming).  If the batch
    # is big, keep >= 2 batch tiles (without dropping TB below ~256) so the
    # "parallel" axis can shard across v7x's two TensorCores.
    max_tb = Bq
    if Bq >= 512:
        max_tb = max(256, _round_up(Bq // 2, 16))
    tb_cands = [t for t in _TB_CANDIDATES if t <= max_tb] or [min(Bq, 16)]
    if tb is not None:
        tb_cands = [_round_up(min(tb, Bq), 16)]

    # Prefer the whole padded latent dim (no reduction axis at all); else the
    # largest 128-multiple that divides Lp.
    tl_cands = [Lp] + [t for t in (2048, 1024, 512, 256, 128)
                       if t < Lp and Lp % t == 0]
    if tl is not None and tl <= Lp and Lp % tl == 0:
        tl_cands = [tl]

    for tb_c in tb_cands:
        for tl_c in tl_cands:
            if _working_set_bytes(tb_c, tl_c, Dp) <= vmem_budget:
                return tb_c, tl_c
    return tb_cands[-1], tl_cands[-1]


# ----------------------------- kernels ------------------------------------

def _sae_kernel_single(x_ref, we_ref, be_ref, wd_ref, bd_ref,
                       xrecon_ref, zsparse_ref, *, threshold):
    # Encoder: z = relu(x @ We^T + be).  Contract on the last dim of both
    # operands so untransposed nn.Linear weights feed the MXU directly.
    z = lax.dot_general(
        x_ref[...], we_ref[...],
        dimension_numbers=(((1,), (1,)), ((), ())),
        preferred_element_type=jnp.float32)                     # (TB, Lp) f32
    z = jnp.maximum(z + be_ref[...], 0.0)
    z_sparse = jnp.where(z >= threshold, z, 0.0)
    z_bf = z_sparse.astype(jnp.bfloat16)
    zsparse_ref[...] = z_bf.astype(zsparse_ref.dtype)

    # Decoder: x_recon = sigmoid(z_sparse @ Wd^T + bd).
    y = lax.dot_general(
        z_bf, wd_ref[...],
        dimension_numbers=(((1,), (1,)), ((), ())),
        preferred_element_type=jnp.float32) + bd_ref[...]       # (TB, Dp) f32
    xrecon_ref[...] = jax.nn.sigmoid(y).astype(xrecon_ref.dtype)


def _sae_kernel_multi(x_ref, we_ref, be_ref, wd_ref, bd_ref,
                      xrecon_ref, zsparse_ref, *, threshold):
    l = pl.program_id(1)
    last = pl.num_programs(1) - 1

    z = lax.dot_general(
        x_ref[...], we_ref[...],
        dimension_numbers=(((1,), (1,)), ((), ())),
        preferred_element_type=jnp.float32)                     # (TB, TL) f32
    z = jnp.maximum(z + be_ref[...], 0.0)
    z_sparse = jnp.where(z >= threshold, z, 0.0)
    z_bf = z_sparse.astype(jnp.bfloat16)
    zsparse_ref[...] = z_bf.astype(zsparse_ref.dtype)

    # Decoder partial sum, accumulated directly into the resident f32 output
    # block (no separate VMEM scratch).
    partial = lax.dot_general(
        z_bf, wd_ref[...],
        dimension_numbers=(((1,), (1,)), ((), ())),
        preferred_element_type=jnp.float32)                     # (TB, Dp) f32

    @pl.when(l == 0)
    def _():
        xrecon_ref[...] = partial

    @pl.when(jnp.logical_and(l > 0, l < last))
    def _():
        xrecon_ref[...] += partial

    @pl.when(l == last)
    def _():
        # Fuse the last partial + bias + sigmoid -> one read, one write.
        y = xrecon_ref[...] + partial + bd_ref[...]
        xrecon_ref[...] = jax.nn.sigmoid(y).astype(xrecon_ref.dtype)


# ----------------------------- wrappers ------------------------------------

def prepare_sparse_ae_weights(w_enc, b_enc, w_dec, b_dec):
    """One-time pad + f32->bf16 cast of the weights (hoisted out of hot path).

    w_enc: (L, D)  b_enc: (L,)  w_dec: (D, L)  b_dec: (D,)   (nn.Linear layout)
    """
    L, D = w_enc.shape
    Dp = _round_up(D, 128)
    Lp = _round_up(L, 128)
    return {
        "wep": _pad2(jnp.asarray(w_enc, jnp.bfloat16), Lp, Dp),          # (Lp, Dp)
        "wdp": _pad2(jnp.asarray(w_dec, jnp.bfloat16), Dp, Lp),          # (Dp, Lp)
        "bep": _pad2(jnp.asarray(b_enc, jnp.float32).reshape(1, L), 1, Lp),
        "bdp": _pad2(jnp.asarray(b_dec, jnp.float32).reshape(1, D), 1, Dp),
        "D": D, "L": L, "Dp": Dp, "Lp": Lp,
    }


def sparse_threshold_autoencoder(x, params, threshold=0.1, *, tb=None, tl=None):
    """x: (B, D) f32 -> (x_recon f32 (B, D), z_sparse bf16 (B, L))."""
    B, D = x.shape
    assert D == params["D"], (D, params["D"])
    L, Dp, Lp = params["L"], params["Dp"], params["Lp"]

    vmem_cap = _vmem_capacity_bytes()
    # Leave ~40% headroom for Mosaic-internal scratch / pipeline buffers.
    TB, TL = _choose_tiles(B, Dp, Lp, int(vmem_cap * 0.6), tb=tb, tl=tl)
    Bp = _round_up(B, TB)
    vmem_limit = min(vmem_cap * 3 // 4,
                     max(2 * _working_set_bytes(TB, TL, Dp), 32 * 1024 * 1024))

    xp = _pad2(x.astype(jnp.bfloat16), Bp, Dp)                           # (Bp, Dp)

    out_shape = (
        jax.ShapeDtypeStruct((Bp, Dp), jnp.float32),    # x_recon
        jax.ShapeDtypeStruct((Bp, Lp), jnp.bfloat16),   # z_sparse (bf16 writeback)
    )
    thr = float(threshold)

    if TL == Lp:
        # Fast path: whole latent dim resident -> no reduction axis, no
        # accumulator / pl.when machinery, no per-step grid overhead.
        grid_spec = pltpu.PrefetchScalarGridSpec(
            num_scalar_prefetch=0,
            grid=(Bp // TB,),
            in_specs=[
                pl.BlockSpec((TB, Dp), lambda i: (i, 0)),    # x
                pl.BlockSpec((Lp, Dp), lambda i: (0, 0)),    # W_enc
                pl.BlockSpec((1, Lp),  lambda i: (0, 0)),    # b_enc
                pl.BlockSpec((Dp, Lp), lambda i: (0, 0)),    # W_dec
                pl.BlockSpec((1, Dp),  lambda i: (0, 0)),    # b_dec
            ],
            out_specs=[
                pl.BlockSpec((TB, Dp), lambda i: (i, 0)),    # x_recon
                pl.BlockSpec((TB, Lp), lambda i: (i, 0)),    # z_sparse
            ],
        )
        kernel = functools.partial(_sae_kernel_single, threshold=thr)
        dim_sem = ("parallel",)
    else:
        # Latent-tiled path: decoder reduction over l, accumulated in the
        # resident x_recon block.
        grid_spec = pltpu.PrefetchScalarGridSpec(
            num_scalar_prefetch=0,
            grid=(Bp // TB, Lp // TL),
            in_specs=[
                pl.BlockSpec((TB, Dp), lambda i, l: (i, 0)),   # x (resident)
                pl.BlockSpec((TL, Dp), lambda i, l: (l, 0)),   # W_enc block
                pl.BlockSpec((1, TL),  lambda i, l: (0, l)),   # b_enc block
                pl.BlockSpec((Dp, TL), lambda i, l: (0, l)),   # W_dec block
                pl.BlockSpec((1, Dp),  lambda i, l: (0, 0)),   # b_dec
            ],
            out_specs=[
                pl.BlockSpec((TB, Dp), lambda i, l: (i, 0)),   # x_recon (acc)
                pl.BlockSpec((TB, TL), lambda i, l: (i, l)),   # z_sparse
            ],
        )
        kernel = functools.partial(_sae_kernel_multi, threshold=thr)
        dim_sem = ("parallel", "arbitrary")

    x_recon_p, z_sparse_p = pl.pallas_call(
        kernel,
        out_shape=out_shape,
        grid_spec=grid_spec,
        compiler_params=pltpu.CompilerParams(
            dimension_semantics=dim_sem,
            vmem_limit_bytes=int(vmem_limit)),
    )(xp, params["wep"], params["bep"], params["wdp"], params["bdp"])

    return x_recon_p[:B, :D], z_sparse_p[:B, :L]


# ----------------------------- demo / check --------------------------------

if __name__ == "__main__":
    def reference(x, w_enc, b_enc, w_dec, b_dec, threshold):
        # Same bf16 operand rounding as the kernel (bf16 MXU inputs, f32 acc).
        xb = x.astype(jnp.bfloat16).astype(jnp.float32)
        web = w_enc.astype(jnp.bfloat16).astype(jnp.float32)
        wdb = w_dec.astype(jnp.bfloat16).astype(jnp.float32)
        z = jnp.maximum(xb @ web.T + b_enc, 0.0)
        z_sp = jnp.where(z >= threshold, z, 0.0)
        z_sp_bf = z_sp.astype(jnp.bfloat16).astype(jnp.float32)
        x_rec = jax.nn.sigmoid(z_sp_bf @ wdb.T + b_dec)
        return x_rec, z_sp_bf

    def make_case(key, batch, input_dim, latent_dim):
        kx, kwe, kbe, kwd, kbd = jax.random.split(key, 5)
        x = jax.random.normal(kx, (batch, input_dim), dtype=jnp.float32)
        be_b = 1.0 / (input_dim ** 0.5)
        bd_b = 1.0 / (latent_dim ** 0.5)
        w_enc = jax.random.uniform(kwe, (latent_dim, input_dim),
                                   minval=-be_b, maxval=be_b)
        b_enc = jax.random.uniform(kbe, (latent_dim,), minval=-be_b, maxval=be_b)
        w_dec = jax.random.uniform(kwd, (input_dim, latent_dim),
                                   minval=-bd_b, maxval=bd_b)
        b_dec = jax.random.uniform(kbd, (input_dim,), minval=-bd_b, maxval=bd_b)
        return x, w_enc, b_enc, w_dec, b_dec

    threshold = 0.1
    k1, k2 = jax.random.split(jax.random.PRNGKey(0))

    # Case 1: single latent-tile fast path, 2 batch tiles (B=512 -> TB=256).
    x, we, be, wd, bd = make_case(k1, 512, 48, 24)
    params = prepare_sparse_ae_weights(we, be, wd, bd)
    x_rec, z_sp = sparse_threshold_autoencoder(x, params, threshold)
    jax.block_until_ready((x_rec, z_sp))
    x_rec_ref, z_sp_ref = reference(x, we, be, wd, bd, threshold)
    assert x_rec.shape == (512, 48) and z_sp.shape == (512, 24)
    assert z_sp.dtype == jnp.bfloat16
    assert jnp.allclose(z_sp.astype(jnp.float32), z_sp_ref,
                        atol=2e-2, rtol=2e-2), (
        float(jnp.max(jnp.abs(z_sp.astype(jnp.float32) - z_sp_ref))))
    assert jnp.allclose(x_rec, x_rec_ref, atol=3e-3, rtol=3e-3), (
        float(jnp.max(jnp.abs(x_rec - x_rec_ref))))

    # Case 2: force the multi-latent-tile reduction path (TL=128 < Lp=384).
    x, we, be, wd, bd = make_case(k2, 128, 96, 384)
    params = prepare_sparse_ae_weights(we, be, wd, bd)
    x_rec, z_sp = sparse_threshold_autoencoder(x, params, threshold, tl=128)
    jax.block_until_ready((x_rec, z_sp))
    x_rec_ref, z_sp_ref = reference(x, we, be, wd, bd, threshold)
    assert x_rec.shape == (128, 96) and z_sp.shape == (128, 384)
    assert jnp.allclose(z_sp.astype(jnp.float32), z_sp_ref,
                        atol=2e-2, rtol=2e-2), (
        float(jnp.max(jnp.abs(z_sp.astype(jnp.float32) - z_sp_ref))))
    assert jnp.allclose(x_rec, x_rec_ref, atol=3e-3, rtol=3e-3), (
        float(jnp.max(jnp.abs(x_rec - x_rec_ref))))

    print("KERNEL_OK")
</pallas_src>

<mosaic_0001>
module attributes {stable_mosaic.version = 11 : i64} {
  func.func @_sae_kernel_single(%arg0: i32, %arg1: memref<256x128xbf16, #tpu.memory_space<vmem>>, %arg2: memref<128x128xbf16, #tpu.memory_space<vmem>>, %arg3: memref<1x128xf32, #tpu.memory_space<vmem>>, %arg4: memref<128x128xbf16, #tpu.memory_space<vmem>>, %arg5: memref<1x128xf32, #tpu.memory_space<vmem>>, %arg6: memref<256x128xf32, #tpu.memory_space<vmem>>, %arg7: memref<256x128xbf16, #tpu.memory_space<vmem>>) attributes {dimension_semantics = [#tpu.dimension_semantics<parallel>], iteration_bounds = array<i64: 2>, scalar_prefetch = 0 : i64, scratch_operands = 0 : i64, tpu.core_type = #tpu.core_type<tc>, window_params = [{transform_indices = @transform_0, window_bounds = array<i64: 256, 128>}, {pipeline_mode = #tpu.pipeline_mode<synchronous>, transform_indices = @transform_1, window_bounds = array<i64: 128, 128>}, {pipeline_mode = #tpu.pipeline_mode<synchronous>, transform_indices = @transform_2, window_bounds = array<i64: 1, 128>}, {pipeline_mode = #tpu.pipeline_mode<synchronous>, transform_indices = @transform_3, window_bounds = array<i64: 128, 128>}, {pipeline_mode = #tpu.pipeline_mode<synchronous>, transform_indices = @transform_4, window_bounds = array<i64: 1, 128>}, {transform_indices = @transform_5, window_bounds = array<i64: 256, 128>}, {transform_indices = @transform_6, window_bounds = array<i64: 256, 128>}]} {
    %c0 = arith.constant 0 : index
    %c0_0 = arith.constant 0 : index
    %0 = vector.load %arg1[%c0, %c0_0] : memref<256x128xbf16, #tpu.memory_space<vmem>>, vector<256x128xbf16>
    %c0_1 = arith.constant 0 : index
    %c0_2 = arith.constant 0 : index
    %1 = vector.load %arg2[%c0_1, %c0_2] : memref<128x128xbf16, #tpu.memory_space<vmem>>, vector<128x128xbf16>
    %cst = arith.constant dense<0.000000e+00> : vector<256x128xf32>
    %2 = tpu.matmul %0, %1, %cst {dimension_numbers = #tpu.dot_dimension_numbers<[1], [1], [0], [0], [0, 0, 1, 0], [], []>} : vector<256x128xbf16>, vector<128x128xbf16>, vector<256x128xf32> -> vector<256x128xf32>
    %c0_3 = arith.constant 0 : index
    %c0_4 = arith.constant 0 : index
    %3 = vector.load %arg3[%c0_3, %c0_4] : memref<1x128xf32, #tpu.memory_space<vmem>>, vector<1x128xf32>
    %4 = vector.broadcast %3 : vector<1x128xf32> to vector<256x128xf32>
    %5 = arith.addf %2, %4 : vector<256x128xf32>
    %cst_5 = arith.constant 0.000000e+00 : f32
    %6 = vector.broadcast %cst_5 : f32 to vector<256x128xf32>
    %7 = arith.maximumf %5, %6 : vector<256x128xf32>
    %cst_6 = arith.constant 1.000000e-01 : f32
    %8 = vector.broadcast %cst_6 : f32 to vector<256x128xf32>
    %9 = arith.cmpf oge, %7, %8 : vector<256x128xf32>
    %cst_7 = arith.constant 0.000000e+00 : f32
    %10 = vector.broadcast %cst_7 : f32 to vector<256x128xf32>
    %11 = arith.select %9, %7, %10 : vector<256x128xi1>, vector<256x128xf32>
    %12 = arith.truncf %11 : vector<256x128xf32> to vector<256x128xbf16>
    %c0_8 = arith.constant 0 : index
    %c0_9 = arith.constant 0 : index
    %13 = vector.load %arg7[%c0_8, %c0_9] : memref<256x128xbf16, #tpu.memory_space<vmem>>, vector<256x128xbf16>
    tpu.vector_store %arg7[%c0_8, %c0_9], %12 {strides = array<i32>} : memref<256x128xbf16, #tpu.memory_space<vmem>>, vector<256x128xbf16>,
    %c0_10 = arith.constant 0 : index
    %c0_11 = arith.constant 0 : index
    %14 = vector.load %arg4[%c0_10, %c0_11] : memref<128x128xbf16, #tpu.memory_space<vmem>>, vector<128x128xbf16>
    %cst_12 = arith.constant dense<0.000000e+00> : vector<256x128xf32>
    %15 = tpu.matmul %12, %14, %cst_12 {dimension_numbers = #tpu.dot_dimension_numbers<[1], [1], [0], [0], [0, 0, 1, 0], [], []>} : vector<256x128xbf16>, vector<128x128xbf16>, vector<256x128xf32> -> vector<256x128xf32>
    %c0_13 = arith.constant 0 : index
    %c0_14 = arith.constant 0 : index
    %16 = vector.load %arg5[%c0_13, %c0_14] : memref<1x128xf32, #tpu.memory_space<vmem>>, vector<1x128xf32>
    %17 = vector.broadcast %16 : vector<1x128xf32> to vector<256x128xf32>
    %18 = arith.addf %15, %17 : vector<256x128xf32>
    %19 = arith.negf %18 : vector<256x128xf32>
    %20 = math.exp %19 : vector<256x128xf32>
    %cst_15 = arith.constant 1.000000e+00 : f32
    %21 = vector.broadcast %cst_15 : f32 to vector<256x128xf32>
    %22 = arith.addf %21, %20 : vector<256x128xf32>
    %23 = arith.divf %21, %22 : vector<256x128xf32>
    %c0_16 = arith.constant 0 : index
    %c0_17 = arith.constant 0 : index
    %24 = vector.load %arg6[%c0_16, %c0_17] : memref<256x128xf32, #tpu.memory_space<vmem>>, vector<256x128xf32>
    tpu.vector_store %arg6[%c0_16, %c0_17], %23 {strides = array<i32>} : memref<256x128xf32, #tpu.memory_space<vmem>>, vector<256x128xf32>,
    return
  }
  func.func @transform_0(%arg0: i32) -> (i32, i32) {
    %c0_i32 = arith.constant 0 : i32
    %c0_i32_0 = arith.constant 0 : i32
    return %arg0, %c0_i32 : i32, i32
  }
  func.func @transform_1(%arg0: i32) -> (i32, i32) {
    %c0_i32 = arith.constant 0 : i32
    %c0_i32_0 = arith.constant 0 : i32
    %c0_i32_1 = arith.constant 0 : i32
    return %c0_i32, %c0_i32_0 : i32, i32
  }
  func.func @transform_2(%arg0: i32) -> (i32, i32) {
    %c0_i32 = arith.constant 0 : i32
    %c0_i32_0 = arith.constant 0 : i32
    %c0_i32_1 = arith.constant 0 : i32
    return %c0_i32, %c0_i32_0 : i32, i32
  }
  func.func @transform_3(%arg0: i32) -> (i32, i32) {
    %c0_i32 = arith.constant 0 : i32
    %c0_i32_0 = arith.constant 0 : i32
    %c0_i32_1 = arith.constant 0 : i32
    return %c0_i32, %c0_i32_0 : i32, i32
  }
  func.func @transform_4(%arg0: i32) -> (i32, i32) {
    %c0_i32 = arith.constant 0 : i32
    %c0_i32_0 = arith.constant 0 : i32
    %c0_i32_1 = arith.constant 0 : i32
    return %c0_i32, %c0_i32_0 : i32, i32
  }
  func.func @transform_5(%arg0: i32) -> (i32, i32) {
    %c0_i32 = arith.constant 0 : i32
    %c0_i32_0 = arith.constant 0 : i32
    return %arg0, %c0_i32 : i32, i32
  }
  func.func @transform_6(%arg0: i32) -> (i32, i32) {
    %c0_i32 = arith.constant 0 : i32
    %c0_i32_0 = arith.constant 0 : i32
    return %arg0, %c0_i32 : i32, i32
  }
}

</mosaic_0001>

<bundles_post_ra>
// kernel: tpu_custom_call.1
= control target key start
LH: loop header
LB: loop body
LE: loop exit
PB: predicated region body
PF: predicated region fallthrough
CT: control target
= control target key end

     0   :  { %12 = vsyncpa [#allocation3], 0  ;;  %s3289_s0 = inlined_call_operand.hbm [shape: bf16[512,128], index: 0, kind: input, shape index: {}]   ;;  %s3290_s1 = inlined_call_operand.hbm [shape: bf16[128,128], index: 1, kind: input, shape index: {}]   ;;  %s3291_s2 = inlined_call_operand.vmem [shape: f32[1,128], index: 2, kind: input, shape index: {}]   ;;  %s3292_s3 = inlined_call_operand.hbm [shape: bf16[128,128], index: 3, kind: input, shape index: {}]   ;;  %s3293_s4 = inlined_call_operand.vmem [shape: f32[1,128], index: 4, kind: input, shape index: {}]   ;;  %s3294_s5 = inlined_call_operand.hbm [shape: f32[512,128], index: 5, kind: output, shape index: {0}]   ;;  %s3295_s6 = inlined_call_operand.hbm [shape: bf16[512,128], index: 6, kind: output, shape index: {1}]  }
   0x1   :  { %14 = vsyncpa [#allocation3 + $0x1], 0 }
   0x2   :  { %15 = vsyncpa [#allocation6], 0 }
   0x3   :  { %16 = vsyncpa [#allocation4], 0 }
   0x4   :  { %18 = vsyncpa [#allocation4 + $0x1], 0 }
   0x5   :  { %19 = vsyncpa [#allocation10], 0 }
   0x6   :  { %21 = vsyncpa [#allocation10 + $0x1], 0  ;;  %s2594_s21 = smov 0   ;;  %s2596_s22 = smov 0  }
   0x7   :  { %s2598_s23 = smov 0   ;;  %s2600_s24 = smov 0  }
   0x8 LB: > { %s2615_s25 = sadd.s32 4294967295, %s2549_s24   ;;  %s1820_s26 = sadd.s32 4294967294, %s2549_s24   ;;  %s2549_s24 = sphi %s2600_s24, %s3341_s24   ;;  %s2545_s23 = sphi %s2598_s23, %s3340_s23   ;;  %s2541_s22 = sphi %s2596_s22, %s3339_s22   ;;  %s2537_s21 = sphi %s2594_s21, %s3338_s21  }
   0x9   : > { %p47_p0 = scmp.ne.s32.totalorder %s2541_s22, %s2537_s21  ;;  %p48_p1 = scmp.eq.s32.totalorder %s2615_s25, 0 }
   0xa   : > { %p155_p2 = scmp.eq.s32.totalorder %s2615_s25, 1  ;;  %p161_p3 = scmp.eq.s32.totalorder %s1820_s26, 1 }
   0xb   : > { %p2624_p4 = por %p48_p1, %p47_p0  ;;  %p1821_p5 = scmp.ge.s32.totalorder %s2549_s24, 1 }
   0xc   : > { %p2629_p6 = por %p161_p3, %p47_p0  ;;  %p194_p7 = scmp.lt.s32.totalorder %s2549_s24, 3 }
   0xd   : > { %s205_s7 = sshll.u32 %s3290_s1, 4  ;;  %s2551_s9 = smov [#allocation5]   ;;  %s206_s7 = int_to_ptr.hbm [resolvable:$true] %s205_s7 }
   0xe   : > { %p2637_p8 = pnand %p1821_p5, %p194_p7  ;;  %s207_s10 = sshll.u32 %s2551_s9, 4  ;;  %s208_s10 = int_to_ptr.vmem [resolvable:$true] %s207_s10 }
   0xf   : > { %s222_s13 = sshll.u32 %s3292_s3, 4  ;;  %s3296_s14 = smov 64   ;;  %s223_s13 = int_to_ptr.hbm [resolvable:$true] %s222_s13 }
  0x10   : > { %p2162_p9 = pneg %p2637_p8  ;;  %s3297_s15 = smov 4  }
  0x11   : > { %s2554_s16 = smov [#allocation7]   ;;  %s2656_s18 = sadd.s32 1, %s2549_s24  }
  0x12   : > { %p2163_p10 = pnand %p2162_p9, %p48_p1  ;;  %s224_s17 = sshll.u32 %s2554_s16, 4  ;;  %s225_s17 = int_to_ptr.vmem [resolvable:$true] %s224_s17 }
  0x13   : > { %s34_s19 = sadd.s32 1, %s2545_s23  ;;  %s31_s20 = ssub.s32 %s2549_s24, %s2656_s18 }
  0x14   : > { %2165 = dma.hbm_to_vmem [thread:$0]  (!%p2163_p10), %s206_s7, 1024, %s208_s10, [#allocation6], %s3296_s14, %s3296_s14, %s3297_s15  }
  0x15   : > { %2168 = dma.hbm_to_vmem [thread:$0]  (!%p2163_p10), %s223_s13, 1024, %s225_s17, [#allocation6], %s3296_s14, %s3296_s14, %s3297_s15  }
  0x16   : > { %p41_p12 = scmp.ne.s32.totalorder %s2545_s23, %s2541_s22  ;;  %p32_p13 = scmp.eq.s32.totalorder %s31_s20, 0 }
  0x17   : > { %p42_p0 = scmp.eq.s32.totalorder %s2549_s24, 0  ;;  %p2182_p5 = scmp.lt.s32.totalorder %s2549_s24, 2 }
  0x18   : > { %p2666_p3 = por %p155_p2, %p41_p12  ;;  %s241_s30 = sand.u32 1, %s2545_s23  }
  0x19   : > { %s2672_s29 = scalar_select %p32_p13, %s2545_s23, %s34_s19  }
  0x1a   : > { %p43_p7 = por %p42_p0, %p41_p12  ;;  %s1825_s7 = sshll.u32 %s241_s30, 7 }
  0x1b   : > { %s2002_s9 = sshll.u32 %s2549_s24, 7  ;;  %s245_s13 = scalar_lea.vmem [#allocation2], %s1825_s7 }
  0x1c   : > { %s250_s12 = scalar_lea.hbm %s3289_s0, %s2002_s9  ;;  %s253_s16 = sshll.u32 %s245_s13, 4  ;;  %s254_s16 = int_to_ptr.vmem [resolvable:$true] %s253_s16 }
  0x1d   : > { %s251_s17 = sshll.u32 %s250_s12, 4  ;;  %p2679_p2 = pnand %p2182_p5, %p43_p7  ;;  %s252_s17 = int_to_ptr.hbm [resolvable:$true] %s251_s17 }
  0x1e   : > { %s242_s19 = scalar_lea.sflag [#allocation3], %s241_s30  ;;  %s2417_s14 = sshra.s32 %s252_s17, 4  ;;  %s2418_s14 = int_to_ptr.hbm [resolvable:$true] %s2417_s14 }
  0x1f   : > { %s2419_s15 = scalar_lea.hbm %s2418_s14, 128  ;;  %p2421_p10 = pneg %p2679_p2 }
  0x20   : > { %p2420_p9 = scmp.ne.s32.totalorder %s2418_s14, %s2419_s15  ;;  %s2424_s10 = scalar_lea.hbm %s3289_s0, 256 }
  0x21   : > { %p2425_p0 = scmp.lt.s32.totalorder %s2418_s14, %s3289_s0  ;;  %p2426_p5 = scmp.lt.s32.totalorder %s2424_s10, %s2419_s15 }
  0x22   : > { %p2422_p12 = pnand %p2421_p10, %p2420_p9 }
  0x23   : > { %p2427_p7 = por %p2426_p5, %p2425_p0 }
  0x24   : > { %p2423_p13 = pneg %p2422_p12 }
  0x26   : > { %p2428_p11 = pnand %p2427_p7, %p2423_p13 }
  0x28   : > { %2431 = shalt.err (!%p2428_p11)
}
  0x29   : > { %s3303_s30 = smov 4   ;;  %s3304_s13 = smov 64  }
  0x2a   : > { %2172 = dma.hbm_to_vmem [thread:$0]  (!%p2679_p2), %s252_s17, 2048, %s254_s16, %s242_s19, %s3304_s13, %s3304_s13, %s3303_s30  }
  0x2b   : > { %265 = sbr.rel (%p2637_p8) target bundleno = 565 (0x235), region = 40  ;;  %s2699_s9 = sand.u32 (!%p2637_p8), 1, %s2541_s22  }
  0x2c   : > { %s1829_s14 = sshll.u32 (!%p2637_p8), %s2699_s9, 7  ;;  %s268_s15 = scalar_lea.sflag (!%p2637_p8), [#allocation3], %s2699_s9 }
  0x2d   : > { %s2705_s7 = scalar_lea.vmem (!%p2637_p8), [#allocation2], %s1829_s14 }
  0x30   : > { %2520 = dma.done.wait (%p2624_p4), %s268_s15, 2048  }
  0x31   : > { %2522 = vsyncadd (%p2624_p4), %s268_s15, 4294965248 }
  0x32   : > { %2524 = dma.done.wait (%p48_p1), [#allocation6], 2048  }
  0x33   : > { %2526 = vsyncadd (%p48_p1), [#allocation6], 4294965248  ;;  %v2026_v0 = vld [vmem:[#allocation5 + $0x38] sm:$0xff]  ;;  %v2025_v1 = vld [vmem:[#allocation5 + $0x30] sm:$0xff]  ;;  %s2742_s16 = scalar_lea.vmem [#allocation9], %s1829_s14  ;;  %s1832_s19 = sshll.u32 %s2699_s9, 8 }
  0x34   : > { %515 = vmatpush.bf16.xpose.msra.mxu0 %v2026_v0  ;;  %2132 = vmatpush.bf16.xpose.msra.mxu2 %v2026_v0  ;;  %v2024_v2 = vld [vmem:[#allocation5 + $0x28] sm:$0xff]  ;;  %v2023_v3 = vld [vmem:[#allocation5 + $0x20] sm:$0xff]  ;;  %v2022_v4 = vld [vmem:[#allocation5 + $0x18] sm:$0xff]  ;;  %s2806_s10 = scalar_lea.vmem [#allocation8], %s1832_s19  ;;  %s2036_s11 = sshll.u32 %s2615_s25, 7 }
  0x35   : > { %v2021_v5 = vld [vmem:[#allocation5 + $0x10] sm:$0xff]  ;;  %v2020_v6 = vld [vmem:[#allocation5 + $0x8] sm:$0xff]  ;;  %v2019_v7 = vld [vmem:[#allocation5] sm:$0xff]  ;;  %s1692_s12 = sshll.u32 %s2742_s16, 4  ;;  %s1691_s14 = scalar_lea.hbm %s3295_s6, %s2036_s11  ;;  %s2879_s12 = int_to_ptr.vmem [resolvable:$true] %s1692_s12 }
  0x36   : > { %v2003_v8 = vld [vmem:[%s2705_s7] sm:$0xff]  ;;  %v2004_v10 = vld [vmem:[%s2705_s7 + $0x8] sm:$0xff]  ;;  %v2005_v12 = vld [vmem:[%s2705_s7 + $0x10] sm:$0xff]  ;;  %s1694_s15 = sshll.u32 %s1691_s14, 4  ;;  %s2467_s20 = scalar_lea.hbm %s3295_s6, 256  ;;  %s2889_s15 = int_to_ptr.hbm [resolvable:$true] %s1694_s15 }
  0x37   : > { %v2011_v9 = vld [vmem:[%s2705_s7 + $0x40] sm:$0xff]  ;;  %v2012_v11 = vld [vmem:[%s2705_s7 + $0x48] sm:$0xff]  ;;  %v2013_v13 = vld [vmem:[%s2705_s7 + $0x50] sm:$0xff]  ;;  %s2461_s27 = sshra.s32 %s2889_s15, 4  ;;  %s2462_s27 = int_to_ptr.hbm [resolvable:$true] %s2461_s27 }
  0x38   : > { %v2006_v14 = vld [vmem:[%s2705_s7 + $0x18] sm:$0xff]  ;;  %v2033_v17 = vld [vmem:[#allocation7 + $0x30] sm:$0xff]  ;;  %v2007_v18 = vld [vmem:[%s2705_s7 + $0x20] sm:$0xff]  ;;  %s2463_s8 = scalar_lea.hbm %s2462_s27, 128  ;;  %p2468_p11 = scmp.lt.s32.totalorder %s2462_s27, %s3295_s6 }
  0x39   : > { %v2014_v15 = vld [vmem:[%s2705_s7 + $0x58] sm:$0xff]  ;;  %v2015_v19 = vld [vmem:[%s2705_s7 + $0x60] sm:$0xff]  ;;  %v2032_v20 = vld [vmem:[#allocation7 + $0x28] sm:$0xff]  ;;  %p2464_p1 = scmp.ne.s32.totalorder %s2462_s27, %s2463_s8  ;;  %p2469_p2 = scmp.lt.s32.totalorder %s2467_s20, %s2463_s8 }
  0x3a   : > { %v2034_v16 = vld [vmem:[#allocation7 + $0x38] sm:$0xff]  ;;  %v2031_v21 = vld [vmem:[#allocation7 + $0x20] sm:$0xff]  ;;  %v2008_v22 = vld [vmem:[%s2705_s7 + $0x28] sm:$0xff] }
  0x3b   : > { %928 = vmatpush.bf16.xpose.msra.mxu1 %v2034_v16  ;;  %2140 = vmatpush.bf16.xpose.msra.mxu3 %v2034_v16  ;;  %v2016_v23 = vld [vmem:[%s2705_s7 + $0x68] sm:$0xff]  ;;  %v2030_v24 = vld [vmem:[#allocation7 + $0x18] sm:$0xff]  ;;  %v2029_v25 = vld [vmem:[#allocation7 + $0x10] sm:$0xff]  ;;  %p2465_p4 = pnand %p2464_p1, %p2666_p3  ;;  %p2470_p9 = por %p2469_p2, %p2468_p11 }
  0x3c   : > { %516 = vmatpush.bf16.xpose.msra.mxu0 %v2025_v1  ;;  %2133 = vmatpush.bf16.xpose.msra.mxu2 %v2025_v1  ;;  %v2009_v26 = vld [vmem:[%s2705_s7 + $0x30] sm:$0xff]  ;;  %v2028_v28 = vld [vmem:[#allocation7 + $0x8] sm:$0xff]  ;;  %v2027_v29 = vld [vmem:[#allocation7] sm:$0xff] }
  0x3d   : > { %v2017_v27 = vld [vmem:[%s2705_s7 + $0x70] sm:$0xff]  ;;  %v2010_v30 = vld [vmem:[%s2705_s7 + $0x38] sm:$0xff]  ;;  %v2734_v32 = vld [vmem:[%s3291_s2] ss:$0 sm:$0xff]  ;;  %p2466_p8 = pneg %p2465_p4 }
  0x3e   : > { %v2018_v31 = vld [vmem:[%s2705_s7 + $0x78] sm:$0xff]  ;;  %s1663_s7 = scalar_lea.sflag [#allocation10], %s2699_s9 }
  0x3f   : > { %p2471_p10 = pnand %p2470_p9, %p2466_p8 }
  0x43   : > { %929 = vmatpush.bf16.xpose.msra.mxu1 %v2033_v17  ;;  %2141 = vmatpush.bf16.xpose.msra.mxu3 %v2033_v17 }
  0x44   : > { %517 = vmatpush.bf16.xpose.msra.mxu0 %v2024_v2  ;;  %2134 = vmatpush.bf16.xpose.msra.mxu2 %v2024_v2 }
  0x4b   : > { %930 = vmatpush.bf16.xpose.msra.mxu1 %v2032_v20  ;;  %2142 = vmatpush.bf16.xpose.msra.mxu3 %v2032_v20 }
  0x4c   : > { %518 = vmatpush.bf16.xpose.msra.mxu0 %v2023_v3  ;;  %2135 = vmatpush.bf16.xpose.msra.mxu2 %v2023_v3 }
  0x53   : > { %931 = vmatpush.bf16.xpose.msra.mxu1 %v2031_v21  ;;  %2143 = vmatpush.bf16.xpose.msra.mxu3 %v2031_v21 }
  0x54   : > { %519 = vmatpush.bf16.xpose.msra.mxu0 %v2022_v4  ;;  %2136 = vmatpush.bf16.xpose.msra.mxu2 %v2022_v4 }
  0x5b   : > { %932 = vmatpush.bf16.xpose.msra.mxu1 %v2030_v24  ;;  %2144 = vmatpush.bf16.xpose.msra.mxu3 %v2030_v24 }
  0x5c   : > { %520 = vmatpush.bf16.xpose.msra.mxu0 %v2021_v5  ;;  %2137 = vmatpush.bf16.xpose.msra.mxu2 %v2021_v5 }
  0x63   : > { %933 = vmatpush.bf16.xpose.msra.mxu1 %v2029_v25  ;;  %2145 = vmatpush.bf16.xpose.msra.mxu3 %v2029_v25 }
  0x64   : > { %521 = vmatpush.bf16.xpose.msra.mxu0 %v2020_v6  ;;  %2138 = vmatpush.bf16.xpose.msra.mxu2 %v2020_v6 }
  0x6b   : > { %934 = vmatpush.bf16.xpose.msra.mxu1 %v2028_v28  ;;  %2146 = vmatpush.bf16.xpose.msra.mxu3 %v2028_v28 }
  0x6c   : > { %522 = vmatpush.bf16.xpose.msra.mxu0 %v2019_v7  ;;  %2139 = vmatpush.bf16.xpose.msra.mxu2 %v2019_v7 }
  0x73   : > { %523 = vmatmul.bf16.vlgmr.msra.gmra.mxu0 %v2003_v8  ;;  %563 = vmatmul.bf16.vlgmr.msra.gmra.mxu2 %v2011_v9 }
  0x74   : > { %935 = vmatpush.bf16.xpose.msra.mxu1 %v2027_v29  ;;  %2147 = vmatpush.bf16.xpose.msra.mxu3 %v2027_v29 }
  0x83   : > { %528 = vmatmul.bf16.gmra.mxu0 %v2004_v10  ;;  %568 = vmatmul.bf16.gmra.mxu2 %v2012_v11 }
  0x93   : > { %533 = vmatmul.bf16.gmra.mxu0 %v2005_v12  ;;  %573 = vmatmul.bf16.gmra.mxu2 %v2013_v13 }
  0xa3   : > { %538 = vmatmul.bf16.gmra.mxu0 %v2006_v14  ;;  %578 = vmatmul.bf16.gmra.mxu2 %v2014_v15 }
  0xb3   : > { %543 = vmatmul.bf16.gmra.mxu0 %v2007_v18  ;;  %583 = vmatmul.bf16.gmra.mxu2 %v2015_v19 }
  0xc3   : > { %548 = vmatmul.bf16.gmra.mxu0 %v2008_v22  ;;  %588 = vmatmul.bf16.gmra.mxu2 %v2016_v23 }
  0xd3   : > { %553 = vmatmul.bf16.gmra.mxu0 %v2009_v26  ;;  %593 = vmatmul.bf16.gmra.mxu2 %v2017_v27 }
  0xe3   : > { %558 = vmatmul.bf16.gmra.mxu0 %v2010_v30  ;;  %598 = vmatmul.bf16.gmra.mxu2 %v2018_v31 }
  0xf0   : > { %v524_v33 = vpop.f32.mrf.mxu0 }
  0xf1   : > { %v525_v34 = vadd.f32 %v2734_v32, %v524_v33 }
  0xf3   : > { %v604_v35 = vmax.f32 %v525_v34, 0.0 }
  0xf5   : > { %vm636_vm0 = vcmp.ge.f32.partialorder %v604_v35, 0.1 }
  0xf6   : > { %v564_v36 = vpop.f32.mrf.mxu2  ;;  %v668_v38 = vsel %vm636_vm0, %v604_v35, 0.0 }
  0xf7   : > { %v565_v37 = vadd.f32 %v2734_v32, %v564_v36  ;;  %v700_v43 = vpack.c.bf16 %v668_v38, %v668_v38 }
  0xf8   : > { %v526_v39 = vpop.f32.mrf.mxu0 }
  0xf9   : > { %v620_v40 = vmax.f32 %v565_v37, 0.0  ;;  %v527_v41 = vadd.f32 %v2734_v32, %v526_v39  ;;  %v816_v49 = vunpack.c.l.b16 %v700_v43 }
  0xfb   : > { %v605_v42 = vmax.f32 %v527_v41, 0.0  ;;  %vm652_vm1 = vcmp.ge.f32.partialorder %v620_v40, 0.1 }
  0xfc   : > { %v684_v50 = vsel %vm652_vm1, %v620_v40, 0.0 }
  0xfd   : > { %vm637_vm2 = vcmp.ge.f32.partialorder %v605_v42, 0.1  ;;  %v716_v57 = vpack.c.bf16 %v684_v50, %v684_v50 }
  0xfe   : > { %v669_v44 = vsel %vm637_vm2, %v605_v42, 0.0  ;;  %v566_v45 = vpop.f32.mrf.mxu2 }
  0xff   : > { %v2040_v46 = vpack.c.bf16 %v669_v44, %v668_v38  ;;  %v567_v47 = vadd.f32 %v2734_v32, %v566_v45  ;;  %v701_v48 = vpack.c.bf16 %v669_v44, %v669_v44  ;;  %v832_v63 = vunpack.c.l.b16 %v716_v57 }
 0x100   : > { %v529_v51 = vpop.f32.mrf.mxu0 }
 0x101   : > { %2041 = vst [vmem:[%s2742_s16] sm:$0xff] %v2040_v46   ;;  %v621_v52 = vmax.f32 %v567_v47, 0.0  ;;  %v530_v53 = vadd.f32 %v2734_v32, %v529_v51  ;;  %v817_v54 = vunpack.c.l.b16 %v701_v48 }
 0x103   : > { %vm653_vm3 = vcmp.ge.f32.partialorder %v621_v52, 0.1  ;;  %v606_v55 = vmax.f32 %v530_v53, 0.0  ;;  %v848_v56 = vpack.c.b16 %v817_v54, %v816_v49 }
 0x104   : > { %v685_v58 = vsel %vm653_vm3, %v621_v52, 0.0 }
 0x105   : > { %v2080_v59 = vpack.c.bf16 %v685_v58, %v684_v50  ;;  %vm638_vm4 = vcmp.ge.f32.partialorder %v606_v55, 0.1  ;;  %936 = vmatmul.bf16.vlgmr.msra.gmra.mxu1 %v848_v56  ;;  %v717_v60 = vpack.c.bf16 %v685_v58, %v685_v58 }
 0x106   : > { %v569_v61 = vpop.f32.mrf.mxu2  ;;  %v670_v1 = vsel %vm638_vm4, %v606_v55, 0.0 }
 0x107   : > { %2124 = vst [vmem:[%s2742_s16 + $0x40] sm:$0xff] %v2080_v59   ;;  %v570_v62 = vadd.f32 %v2734_v32, %v569_v61  ;;  %v833_v0 = vunpack.c.l.b16 %v717_v60  ;;  %v702_v7 = vpack.c.bf16 %v670_v1, %v670_v1 }
 0x108   : > { %v531_v2 = vpop.f32.mrf.mxu0 }
 0x109   : > { %v622_v3 = vmax.f32 %v570_v62, 0.0  ;;  %v532_v4 = vadd.f32 %v2734_v32, %v531_v2  ;;  %v856_v5 = vpack.c.b16 %v833_v0, %v832_v63  ;;  %v818_v13 = vunpack.c.l.b16 %v702_v7 }
 0x10b   : > { %v607_v6 = vmax.f32 %v532_v4, 0.0  ;;  %976 = vmatmul.bf16.vlgmr.msra.gmra.mxu3 %v856_v5  ;;  %vm654_vm5 = vcmp.ge.f32.partialorder %v622_v3, 0.1 }
 0x10c   : > { %v686_v14 = vsel %vm654_vm5, %v622_v3, 0.0 }
 0x10d   : > { %vm639_vm6 = vcmp.ge.f32.partialorder %v607_v6, 0.1  ;;  %v718_v21 = vpack.c.bf16 %v686_v14, %v686_v14 }
 0x10e   : > { %v671_v8 = vsel %vm639_vm6, %v607_v6, 0.0  ;;  %v571_v9 = vpop.f32.mrf.mxu2 }
 0x10f   : > { %v2045_v10 = vpack.c.bf16 %v671_v8, %v670_v1  ;;  %v572_v11 = vadd.f32 %v2734_v32, %v571_v9  ;;  %v703_v12 = vpack.c.bf16 %v671_v8, %v671_v8  ;;  %v834_v27 = vunpack.c.l.b16 %v718_v21 }
 0x110   : > { %v534_v15 = vpop.f32.mrf.mxu0 }
 0x111   : > { %2117 = vst [vmem:[%s2742_s16 + $0x8] sm:$0xff] %v2045_v10   ;;  %v623_v16 = vmax.f32 %v572_v11, 0.0  ;;  %v535_v17 = vadd.f32 %v2734_v32, %v534_v15  ;;  %v819_v18 = vunpack.c.l.b16 %v703_v12 }
 0x113   : > { %vm655_vm7 = vcmp.ge.f32.partialorder %v623_v16, 0.1  ;;  %v608_v19 = vmax.f32 %v535_v17, 0.0  ;;  %v849_v20 = vpack.c.b16 %v819_v18, %v818_v13 }
 0x114   : > { %v687_v22 = vsel %vm655_vm7, %v623_v16, 0.0 }
 0x115   : > { %v2085_v23 = vpack.c.bf16 %v687_v22, %v686_v14  ;;  %vm640_vm8 = vcmp.ge.f32.partialorder %v608_v19, 0.1  ;;  %941 = vmatmul.bf16.gmra.mxu1 %v849_v20  ;;  %v719_v24 = vpack.c.bf16 %v687_v22, %v687_v22 }
 0x116   : > { %v574_v25 = vpop.f32.mrf.mxu2  ;;  %v672_v29 = vsel %vm640_vm8, %v608_v19, 0.0 }
 0x117   : > { %2125 = vst [vmem:[%s2742_s16 + $0x48] sm:$0xff] %v2085_v23   ;;  %v575_v26 = vadd.f32 %v2734_v32, %v574_v25  ;;  %v835_v28 = vunpack.c.l.b16 %v719_v24  ;;  %v704_v36 = vpack.c.bf16 %v672_v29, %v672_v29 }
 0x118   : > { %v536_v30 = vpop.f32.mrf.mxu0 }
 0x119   : > { %v624_v31 = vmax.f32 %v575_v26, 0.0  ;;  %v537_v33 = vadd.f32 %v2734_v32, %v536_v30  ;;  %v857_v34 = vpack.c.b16 %v835_v28, %v834_v27  ;;  %v820_v42 = vunpack.c.l.b16 %v704_v36 }
 0x11b   : > { %v609_v35 = vmax.f32 %v537_v33, 0.0  ;;  %981 = vmatmul.bf16.gmra.mxu3 %v857_v34  ;;  %vm656_vm9 = vcmp.ge.f32.partialorder %v624_v31, 0.1 }
 0x11c   : > { %v688_v43 = vsel %vm656_vm9, %v624_v31, 0.0 }
 0x11d   : > { %vm641_vm10 = vcmp.ge.f32.partialorder %v609_v35, 0.1  ;;  %v720_v50 = vpack.c.bf16 %v688_v43, %v688_v43 }
 0x11e   : > { %v673_v37 = vsel %vm641_vm10, %v609_v35, 0.0  ;;  %v576_v38 = vpop.f32.mrf.mxu2 }
 0x11f   : > { %v2050_v39 = vpack.c.bf16 %v673_v37, %v672_v29  ;;  %v577_v40 = vadd.f32 %v2734_v32, %v576_v38  ;;  %v705_v41 = vpack.c.bf16 %v673_v37, %v673_v37  ;;  %v836_v56 = vunpack.c.l.b16 %v720_v50 }
 0x120   : > { %v539_v44 = vpop.f32.mrf.mxu0 }
 0x121   : > { %2118 = vst [vmem:[%s2742_s16 + $0x10] sm:$0xff] %v2050_v39   ;;  %v625_v45 = vmax.f32 %v577_v40, 0.0  ;;  %v540_v46 = vadd.f32 %v2734_v32, %v539_v44  ;;  %v821_v47 = vunpack.c.l.b16 %v705_v41 }
 0x123   : > { %vm657_vm11 = vcmp.ge.f32.partialorder %v625_v45, 0.1  ;;  %v610_v48 = vmax.f32 %v540_v46, 0.0  ;;  %v850_v49 = vpack.c.b16 %v821_v47, %v820_v42 }
 0x124   : > { %v689_v51 = vsel %vm657_vm11, %v625_v45, 0.0 }
 0x125   : > { %v2090_v52 = vpack.c.bf16 %v689_v51, %v688_v43  ;;  %vm642_vm12 = vcmp.ge.f32.partialorder %v610_v48, 0.1  ;;  %946 = vmatmul.bf16.gmra.mxu1 %v850_v49  ;;  %v721_v53 = vpack.c.bf16 %v689_v51, %v689_v51 }
 0x126   : > { %v579_v54 = vpop.f32.mrf.mxu2  ;;  %v674_v58 = vsel %vm642_vm12, %v610_v48, 0.0 }
 0x127   : > { %2126 = vst [vmem:[%s2742_s16 + $0x50] sm:$0xff] %v2090_v52   ;;  %v580_v55 = vadd.f32 %v2734_v32, %v579_v54  ;;  %v837_v57 = vunpack.c.l.b16 %v721_v53  ;;  %v706_v0 = vpack.c.bf16 %v674_v58, %v674_v58 }
 0x128   : > { %v541_v59 = vpop.f32.mrf.mxu0 }
 0x129   : > { %v626_v60 = vmax.f32 %v580_v55, 0.0  ;;  %v542_v61 = vadd.f32 %v2734_v32, %v541_v59  ;;  %v858_v62 = vpack.c.b16 %v837_v57, %v836_v56  ;;  %v822_v6 = vunpack.c.l.b16 %v706_v0 }
 0x12b   : > { %v611_v63 = vmax.f32 %v542_v61, 0.0  ;;  %986 = vmatmul.bf16.gmra.mxu3 %v858_v62  ;;  %vm658_vm13 = vcmp.ge.f32.partialorder %v626_v60, 0.1 }
 0x12c   : > { %v690_v7 = vsel %vm658_vm13, %v626_v60, 0.0 }
 0x12d   : > { %vm643_vm14 = vcmp.ge.f32.partialorder %v611_v63, 0.1  ;;  %v722_v14 = vpack.c.bf16 %v690_v7, %v690_v7 }
 0x12e   : > { %v675_v1 = vsel %vm643_vm14, %v611_v63, 0.0  ;;  %v581_v2 = vpop.f32.mrf.mxu2 }
 0x12f   : > { %v2055_v3 = vpack.c.bf16 %v675_v1, %v674_v58  ;;  %v582_v4 = vadd.f32 %v2734_v32, %v581_v2  ;;  %v707_v5 = vpack.c.bf16 %v675_v1, %v675_v1  ;;  %v838_v20 = vunpack.c.l.b16 %v722_v14 }
 0x130   : > { %v544_v8 = vpop.f32.mrf.mxu0 }
 0x131   : > { %2119 = vst [vmem:[%s2742_s16 + $0x18] sm:$0xff] %v2055_v3   ;;  %v627_v9 = vmax.f32 %v582_v4, 0.0  ;;  %v545_v10 = vadd.f32 %v2734_v32, %v544_v8  ;;  %v823_v11 = vunpack.c.l.b16 %v707_v5 }
 0x133   : > { %vm659_vm15 = vcmp.ge.f32.partialorder %v627_v9, 0.1  ;;  %v612_v12 = vmax.f32 %v545_v10, 0.0  ;;  %v851_v13 = vpack.c.b16 %v823_v11, %v822_v6 }
 0x134   : > { %v691_v15 = vsel %vm659_vm15, %v627_v9, 0.0 }
 0x135   : > { %v2095_v16 = vpack.c.bf16 %v691_v15, %v690_v7  ;;  %vm644_vm0 = vcmp.ge.f32.partialorder %v612_v12, 0.1  ;;  %951 = vmatmul.bf16.gmra.mxu1 %v851_v13  ;;  %v723_v17 = vpack.c.bf16 %v691_v15, %v691_v15 }
 0x136   : > { %v584_v18 = vpop.f32.mrf.mxu2  ;;  %v676_v22 = vsel %vm644_vm0, %v612_v12, 0.0 }
 0x137   : > { %2127 = vst [vmem:[%s2742_s16 + $0x58] sm:$0xff] %v2095_v16   ;;  %v585_v19 = vadd.f32 %v2734_v32, %v584_v18  ;;  %v839_v21 = vunpack.c.l.b16 %v723_v17  ;;  %v708_v28 = vpack.c.bf16 %v676_v22, %v676_v22 }
 0x138   : > { %v546_v23 = vpop.f32.mrf.mxu0 }
 0x139   : > { %v628_v24 = vmax.f32 %v585_v19, 0.0  ;;  %v547_v25 = vadd.f32 %v2734_v32, %v546_v23  ;;  %v859_v26 = vpack.c.b16 %v839_v21, %v838_v20  ;;  %v824_v35 = vunpack.c.l.b16 %v708_v28 }
 0x13b   : > { %v613_v27 = vmax.f32 %v547_v25, 0.0  ;;  %991 = vmatmul.bf16.gmra.mxu3 %v859_v26  ;;  %vm660_vm1 = vcmp.ge.f32.partialorder %v628_v24, 0.1 }
 0x13c   : > { %v692_v36 = vsel %vm660_vm1, %v628_v24, 0.0 }
 0x13d   : > { %vm645_vm2 = vcmp.ge.f32.partialorder %v613_v27, 0.1  ;;  %v724_v43 = vpack.c.bf16 %v692_v36, %v692_v36 }
 0x13e   : > { %v677_v29 = vsel %vm645_vm2, %v613_v27, 0.0  ;;  %v586_v30 = vpop.f32.mrf.mxu2 }
 0x13f   : > { %v2060_v31 = vpack.c.bf16 %v677_v29, %v676_v22  ;;  %v587_v33 = vadd.f32 %v2734_v32, %v586_v30  ;;  %v709_v34 = vpack.c.bf16 %v677_v29, %v677_v29  ;;  %v840_v49 = vunpack.c.l.b16 %v724_v43 }
 0x140   : > { %v549_v37 = vpop.f32.mrf.mxu0 }
 0x141   : > { %2120 = vst [vmem:[%s2742_s16 + $0x20] sm:$0xff] %v2060_v31   ;;  %v629_v38 = vmax.f32 %v587_v33, 0.0  ;;  %v550_v39 = vadd.f32 %v2734_v32, %v549_v37  ;;  %v825_v40 = vunpack.c.l.b16 %v709_v34 }
 0x143   : > { %vm661_vm3 = vcmp.ge.f32.partialorder %v629_v38, 0.1  ;;  %v614_v41 = vmax.f32 %v550_v39, 0.0  ;;  %v852_v42 = vpack.c.b16 %v825_v40, %v824_v35 }
 0x144   : > { %v693_v44 = vsel %vm661_vm3, %v629_v38, 0.0 }
 0x145   : > { %v2100_v45 = vpack.c.bf16 %v693_v44, %v692_v36  ;;  %vm646_vm4 = vcmp.ge.f32.partialorder %v614_v41, 0.1  ;;  %956 = vmatmul.bf16.gmra.mxu1 %v852_v42  ;;  %v725_v46 = vpack.c.bf16 %v693_v44, %v693_v44 }
 0x146   : > { %v589_v47 = vpop.f32.mrf.mxu2  ;;  %v678_v51 = vsel %vm646_vm4, %v614_v41, 0.0 }
 0x147   : > { %2128 = vst [vmem:[%s2742_s16 + $0x60] sm:$0xff] %v2100_v45   ;;  %v590_v48 = vadd.f32 %v2734_v32, %v589_v47  ;;  %v841_v50 = vunpack.c.l.b16 %v725_v46  ;;  %v710_v57 = vpack.c.bf16 %v678_v51, %v678_v51 }
 0x148   : > { %v551_v52 = vpop.f32.mrf.mxu0 }
 0x149   : > { %v630_v53 = vmax.f32 %v590_v48, 0.0  ;;  %v552_v54 = vadd.f32 %v2734_v32, %v551_v52  ;;  %v860_v55 = vpack.c.b16 %v841_v50, %v840_v49  ;;  %v826_v63 = vunpack.c.l.b16 %v710_v57 }
 0x14b   : > { %v615_v56 = vmax.f32 %v552_v54, 0.0  ;;  %996 = vmatmul.bf16.gmra.mxu3 %v860_v55  ;;  %vm662_vm5 = vcmp.ge.f32.partialorder %v630_v53, 0.1 }
 0x14c   : > { %v694_v0 = vsel %vm662_vm5, %v630_v53, 0.0 }
 0x14d   : > { %vm647_vm6 = vcmp.ge.f32.partialorder %v615_v56, 0.1  ;;  %v726_v7 = vpack.c.bf16 %v694_v0, %v694_v0 }
 0x14e   : > { %v679_v58 = vsel %vm647_vm6, %v615_v56, 0.0  ;;  %v591_v59 = vpop.f32.mrf.mxu2 }
 0x14f   : > { %v2065_v60 = vpack.c.bf16 %v679_v58, %v678_v51  ;;  %v592_v61 = vadd.f32 %v2734_v32, %v591_v59  ;;  %v711_v62 = vpack.c.bf16 %v679_v58, %v679_v58  ;;  %v842_v13 = vunpack.c.l.b16 %v726_v7 }
 0x150   : > { %v554_v1 = vpop.f32.mrf.mxu0 }
 0x151   : > { %2121 = vst [vmem:[%s2742_s16 + $0x28] sm:$0xff] %v2065_v60   ;;  %v631_v2 = vmax.f32 %v592_v61, 0.0  ;;  %v555_v3 = vadd.f32 %v2734_v32, %v554_v1  ;;  %v827_v4 = vunpack.c.l.b16 %v711_v62 }
 0x153   : > { %vm663_vm7 = vcmp.ge.f32.partialorder %v631_v2, 0.1  ;;  %v616_v5 = vmax.f32 %v555_v3, 0.0  ;;  %v853_v6 = vpack.c.b16 %v827_v4, %v826_v63 }
 0x154   : > { %v695_v8 = vsel %vm663_vm7, %v631_v2, 0.0 }
 0x155   : > { %v2105_v9 = vpack.c.bf16 %v695_v8, %v694_v0  ;;  %vm648_vm8 = vcmp.ge.f32.partialorder %v616_v5, 0.1  ;;  %961 = vmatmul.bf16.gmra.mxu1 %v853_v6  ;;  %v727_v10 = vpack.c.bf16 %v695_v8, %v695_v8 }
 0x156   : > { %v594_v11 = vpop.f32.mrf.mxu2  ;;  %v680_v15 = vsel %vm648_vm8, %v616_v5, 0.0 }
 0x157   : > { %2129 = vst [vmem:[%s2742_s16 + $0x68] sm:$0xff] %v2105_v9   ;;  %v595_v12 = vadd.f32 %v2734_v32, %v594_v11  ;;  %v843_v14 = vunpack.c.l.b16 %v727_v10  ;;  %v712_v21 = vpack.c.bf16 %v680_v15, %v680_v15 }
 0x158   : > { %v556_v16 = vpop.f32.mrf.mxu0 }
 0x159   : > { %v632_v17 = vmax.f32 %v595_v12, 0.0  ;;  %v557_v18 = vadd.f32 %v2734_v32, %v556_v16  ;;  %v861_v19 = vpack.c.b16 %v843_v14, %v842_v13  ;;  %v828_v27 = vunpack.c.l.b16 %v712_v21 }
 0x15b   : > { %v617_v20 = vmax.f32 %v557_v18, 0.0  ;;  %1001 = vmatmul.bf16.gmra.mxu3 %v861_v19  ;;  %vm664_vm9 = vcmp.ge.f32.partialorder %v632_v17, 0.1 }
 0x15c   : > { %v696_v28 = vsel %vm664_vm9, %v632_v17, 0.0 }
 0x15d   : > { %vm649_vm10 = vcmp.ge.f32.partialorder %v617_v20, 0.1  ;;  %v728_v36 = vpack.c.bf16 %v696_v28, %v696_v28 }
 0x15e   : > { %v681_v22 = vsel %vm649_vm10, %v617_v20, 0.0  ;;  %v596_v23 = vpop.f32.mrf.mxu2 }
 0x15f   : > { %v2070_v24 = vpack.c.bf16 %v681_v22, %v680_v15  ;;  %v597_v25 = vadd.f32 %v2734_v32, %v596_v23  ;;  %v713_v26 = vpack.c.bf16 %v681_v22, %v681_v22  ;;  %v844_v42 = vunpack.c.l.b16 %v728_v36 }
 0x160   : > { %v559_v29 = vpop.f32.mrf.mxu0 }
 0x161   : > { %2122 = vst [vmem:[%s2742_s16 + $0x30] sm:$0xff] %v2070_v24   ;;  %v633_v30 = vmax.f32 %v597_v25, 0.0  ;;  %v560_v31 = vadd.f32 %v2734_v32, %v559_v29  ;;  %v829_v33 = vunpack.c.l.b16 %v713_v26 }
 0x163   : > { %vm665_vm11 = vcmp.ge.f32.partialorder %v633_v30, 0.1  ;;  %v618_v34 = vmax.f32 %v560_v31, 0.0  ;;  %v854_v35 = vpack.c.b16 %v829_v33, %v828_v27 }
 0x164   : > { %v697_v37 = vsel %vm665_vm11, %v633_v30, 0.0 }
 0x165   : > { %v2110_v38 = vpack.c.bf16 %v697_v37, %v696_v28  ;;  %vm650_vm12 = vcmp.ge.f32.partialorder %v618_v34, 0.1  ;;  %966 = vmatmul.bf16.gmra.mxu1 %v854_v35  ;;  %v729_v39 = vpack.c.bf16 %v697_v37, %v697_v37 }
 0x166   : > { %v599_v40 = vpop.f32.mrf.mxu2  ;;  %v682_v44 = vsel %vm650_vm12, %v618_v34, 0.0 }
 0x167   : > { %2130 = vst [vmem:[%s2742_s16 + $0x70] sm:$0xff] %v2110_v38   ;;  %v600_v41 = vadd.f32 %v2734_v32, %v599_v40  ;;  %v845_v43 = vunpack.c.l.b16 %v729_v39  ;;  %v714_v50 = vpack.c.bf16 %v682_v44, %v682_v44 }
 0x168   : > { %v561_v45 = vpop.f32.mrf.mxu0 }
 0x169   : > { %v634_v46 = vmax.f32 %v600_v41, 0.0  ;;  %v562_v47 = vadd.f32 %v2734_v32, %v561_v45  ;;  %v862_v48 = vpack.c.b16 %v845_v43, %v844_v42  ;;  %v830_v56 = vunpack.c.l.b16 %v714_v50 }
 0x16b   : > { %v619_v49 = vmax.f32 %v562_v47, 0.0  ;;  %1006 = vmatmul.bf16.gmra.mxu3 %v862_v48  ;;  %vm666_vm13 = vcmp.ge.f32.partialorder %v634_v46, 0.1 }
 0x16c   : > { %v698_v57 = vsel %vm666_vm13, %v634_v46, 0.0 }
 0x16d   : > { %vm651_vm14 = vcmp.ge.f32.partialorder %v619_v49, 0.1  ;;  %v730_v61 = vpack.c.bf16 %v698_v57, %v698_v57 }
 0x16e   : > { %v683_v51 = vsel %vm651_vm14, %v619_v49, 0.0  ;;  %v601_v52 = vpop.f32.mrf.mxu2 }
 0x16f   : > { %v2075_v53 = vpack.c.bf16 %v683_v51, %v682_v44  ;;  %v602_v54 = vadd.f32 %v2734_v32, %v601_v52  ;;  %v715_v55 = vpack.c.bf16 %v683_v51, %v683_v51  ;;  %v846_v1 = vunpack.c.l.b16 %v730_v61  ;;  %v2791_v32 = vld [vmem:[%s3293_s4] ss:$0 sm:$0xff] }
 0x171   : > { %2123 = vst [vmem:[%s2742_s16 + $0x38] sm:$0xff] %v2075_v53   ;;  %v635_v58 = vmax.f32 %v602_v54, 0.0  ;;  %v831_v59 = vunpack.c.l.b16 %v715_v55 }
 0x173   : > { %vm667_vm15 = vcmp.ge.f32.partialorder %v635_v58, 0.1  ;;  %v855_v60 = vpack.c.b16 %v831_v59, %v830_v56 }
 0x174   : > { %v699_v62 = vsel %vm667_vm15, %v635_v58, 0.0 }
 0x175   : > { %v2115_v63 = vpack.c.bf16 %v699_v62, %v698_v57  ;;  %971 = vmatmul.bf16.gmra.mxu1 %v855_v60  ;;  %v731_v0 = vpack.c.bf16 %v699_v62, %v699_v62 }
 0x177   : > { %2131 = vst [vmem:[%s2742_s16 + $0x78] sm:$0xff] %v2115_v63   ;;  %v847_v2 = vunpack.c.l.b16 %v731_v0 }
 0x179   : > { %v863_v3 = vpack.c.b16 %v847_v2, %v846_v1 }
 0x17b   : > { %1011 = vmatmul.bf16.gmra.mxu3 %v863_v3 }
 0x182   : > { %v937_v4 = vpop.f32.mrf.mxu1 }
 0x183   : > { %v938_v5 = vadd.f32 %v2791_v32, %v937_v4 }
 0x185   : > { %v1962_v6 = vmul.f32 -1.442695, %v938_v5 }
 0x187   : > { %2228 = vpow2.f32 %v1962_v6 }
 0x18a   : > { %v939_v7 = vpop.f32.mrf.mxu1 }
 0x18b   : > { %v940_v8 = vadd.f32 %v2791_v32, %v939_v7 }
 0x18d   : > { %v2229_v9 = vpop.eup %2228  ;;  %v1963_v10 = vmul.f32 -1.442695, %v940_v8 }
 0x18e   : > { %v1113_v11 = vadd.f32 1.0, %v2229_v9  ;;  %v977_v12 = vpop.f32.mrf.mxu3 }
 0x18f   : > { %2230 = vpow2.f32 %v1963_v10  ;;  %v978_v13 = vadd.f32 %v2791_v32, %v977_v12 }
 0x190   : > { %2232 = vrcp.f32 %v1113_v11  ;;  %v1154_v27 = vand.u32 2147483647, %v1113_v11  ;;  %v1156_v28 = vand.u32 2147483648, %v1113_v11  ;;  %vm1150_vm1 = vweird.f32 %v1113_v11 }
 0x191   : > { %v1978_v14 = vmul.f32 -1.442695, %v978_v13 }
 0x192   : > { %v942_v15 = vpop.f32.mrf.mxu1  ;;  %v1157_v38 = vor.u32 1.1754944e-38, %v1156_v28  ;;  %vm1155_vm3 = vcmp.eq.f32.partialorder %v1154_v27, 8.507059e+37 }
 0x193   : > { %2234 = vpow2.f32 %v1978_v14  ;;  %v943_v16 = vadd.f32 %v2791_v32, %v942_v15 }
 0x195   : > { %v2231_v17 = vpop.eup %2230  ;;  %v1964_v18 = vmul.f32 -1.442695, %v943_v16 }
 0x196   : > { %v2233_v19 = vpop.eup %2232  ;;  %v1114_v20 = vadd.f32 1.0, %v2231_v17  ;;  %v979_v21 = vpop.f32.mrf.mxu3 }
 0x197   : > { %v1146_v22 = vmul.f32 %v2233_v19, %v1113_v11  ;;  %2236 = vpow2.f32 %v1964_v18  ;;  %v980_v23 = vadd.f32 %v2791_v32, %v979_v21  ;;  %vm1151_vm0 = vweird.f32 %v2233_v19 }
 0x198   : > { %2238 = vrcp.f32 %v1114_v20  ;;  %vm1152_vm2 = vmor %vm1150_vm1, %vm1151_vm0  ;;  %v1169_v46 = vand.u32 2147483647, %v1114_v20  ;;  %v1171_v49 = vand.u32 2147483648, %v1114_v20  ;;  %vm1165_vm5 = vweird.f32 %v1114_v20 }
 0x199   : > { %v2235_v24 = vpop.eup %2234  ;;  %v1147_v25 = vsub.f32 1.0, %v1146_v22  ;;  %v1979_v26 = vmul.f32 -1.442695, %v980_v23 }
 0x19a   : > { %v2798_v29 = vadd.f32 1.0, %v2235_v24  ;;  %v944_v30 = vpop.f32.mrf.mxu1  ;;  %vm1170_vm6 = vcmp.eq.f32.partialorder %v1169_v46, 8.507059e+37  ;;  %v1172_v61 = vor.u32 1.1754944e-38, %v1171_v49 }
 0x19b   : > { %v1148_v31 = vmul.f32 %v2233_v19, %v1147_v25  ;;  %2240 = vpow2.f32 %v1979_v26  ;;  %v945_v33 = vadd.f32 %v2791_v32, %v944_v30 }
 0x19c   : > { %2242 = vrcp.f32 %v2798_v29  ;;  %v1394_v54 = vand.u32 2147483647, %v2798_v29  ;;  %v1396_v55 = vand.u32 2147483648, %v2798_v29  ;;  %vm1390_vm8 = vweird.f32 %v2798_v29 }
 0x19d   : > { %v2237_v34 = vpop.eup %2236  ;;  %v1149_v35 = vadd.f32 %v2233_v19, %v1148_v31  ;;  %v1965_v36 = vmul.f32 -1.442695, %v945_v33 }
 0x19e   : > { %v2239_v37 = vpop.eup %2238  ;;  %v2803_v39 = vadd.f32 1.0, %v2237_v34  ;;  %v982_v40 = vpop.f32.mrf.mxu3  ;;  %vm2821_vm10 = vcmp.eq.f32.partialorder %v1394_v54, 8.507059e+37  ;;  %v1397_v6 = vor.u32 1.1754944e-38, %v1396_v55 }
 0x19f   : > { %v1153_v41 = vsel %vm1152_vm2, %v2233_v19, %v1149_v35  ;;  %v1161_v42 = vmul.f32 %v2239_v37, %v1114_v20  ;;  %2244 = vpow2.f32 %v1965_v36  ;;  %v983_v47 = vadd.f32 %v2791_v32, %v982_v40 }
 0x1a0   : > { %v1158_v43 = vsel %vm1155_vm3, %v1157_v38, %v1153_v41  ;;  %2246 = vrcp.f32 %v2803_v39  ;;  %vm1166_vm4 = vweird.f32 %v2239_v37  ;;  %vm1180_vm11 = vweird.f32 %v2803_v39 }
 0x1a1   : > { %v2241_v44 = vpop.eup %2240  ;;  %1625 = vst [vmem:[%s2806_s10] sm:$0xff] %v1158_v43  ;;  %v1162_v45 = vsub.f32 1.0, %v1161_v42  ;;  %v1980_v59 = vmul.f32 -1.442695, %v983_v47  ;;  %vm1167_vm7 = vmor %vm1165_vm5, %vm1166_vm4  ;;  %v1184_v10 = vand.u32 2147483647, %v2803_v39  ;;  %v1186_v11 = vand.u32 2147483648, %v2803_v39 }
 0x1a2   : > { %v2243_v48 = vpop.eup %2242  ;;  %v2810_v50 = vadd.f32 1.0, %v2241_v44  ;;  %v947_v51 = vpop.f32.mrf.mxu1 }
 0x1a3   : > { %v1163_v52 = vmul.f32 %v2239_v37, %v1162_v45  ;;  %v1386_v53 = vmul.f32 %v2243_v48, %v2798_v29  ;;  %v948_v63 = vadd.f32 %v2791_v32, %v947_v51  ;;  %vm1391_vm9 = vweird.f32 %v2243_v48 }
 0x1a4   : > { %2248 = vrcp.f32 %v2810_v50  ;;  %vm1392_vm12 = vmor %vm1390_vm8, %vm1391_vm9  ;;  %v1409_v19 = vand.u32 2147483647, %v2810_v50  ;;  %v1411_v23 = vand.u32 2147483648, %v2810_v50  ;;  %vm1185_vm15 = vcmp.eq.f32.partialorder %v1184_v10, 8.507059e+37 }
 0x1a5   : > { %v2245_v56 = vpop.eup %2244  ;;  %v1164_v57 = vadd.f32 %v2239_v37, %v1163_v52  ;;  %v1387_v58 = vsub.f32 1.0, %v1386_v53  ;;  %v1966_v12 = vmul.f32 -1.442695, %v948_v63  ;;  %v1187_v26 = vor.u32 1.1754944e-38, %v1186_v11 }
 0x1a6   : > { %v2247_v60 = vpop.eup %2246  ;;  %v2817_v62 = vadd.f32 1.0, %v2245_v56  ;;  %v984_v0 = vpop.f32.mrf.mxu3  ;;  %vm1405_vm0 = vweird.f32 %v2810_v50  ;;  %vm1410_vm2 = vcmp.eq.f32.partialorder %v1409_v19, 8.507059e+37  ;;  %v1412_v38 = vor.u32 1.1754944e-38, %v1411_v23 }
 0x1a7   : > { %v1168_v1 = vsel %vm1167_vm7, %v2239_v37, %v1164_v57  ;;  %v1388_v2 = vmul.f32 %v2243_v48, %v1387_v58  ;;  %v1176_v3 = vmul.f32 %v2247_v60, %v2803_v39  ;;  %v985_v13 = vadd.f32 %v2791_v32, %v984_v0 }
 0x1a8   : > { %v1173_v4 = vsel %vm1170_vm6, %v1172_v61, %v1168_v1  ;;  %2250 = vrcp.f32 %v2817_v62  ;;  %vm1181_vm13 = vweird.f32 %v2247_v60  ;;  %v1199_v41 = vand.u32 2147483647, %v2817_v62 }
 0x1a9   : > { %1626 = vst [vmem:[%s2806_s10 + $0x8] sm:$0xff] %v1173_v4  ;;  %v1389_v7 = vadd.f32 %v2243_v48, %v1388_v2  ;;  %v1177_v8 = vsub.f32 1.0, %v1176_v3  ;;  %2252 = vpow2.f32 %v1980_v59  ;;  %v1981_v20 = vmul.f32 -1.442695, %v985_v13  ;;  %vm1182_vm14 = vmor %vm1180_vm11, %vm1181_vm13 }
 0x1aa   : > { %v2249_v9 = vpop.eup %2248  ;;  %v949_v14 = vpop.f32.mrf.mxu1  ;;  %2254 = vpow2.f32 %v1966_v12  ;;  %v1201_v42 = vand.u32 2147483648, %v2817_v62  ;;  %vm1195_vm5 = vweird.f32 %v2817_v62  ;;  %vm1200_vm7 = vcmp.eq.f32.partialorder %v1199_v41, 8.507059e+37 }
 0x1ab   : > { %v1393_v15 = vsel %vm1392_vm12, %v2243_v48, %v1389_v7  ;;  %v1178_v16 = vmul.f32 %v2247_v60, %v1177_v8  ;;  %v1401_v17 = vmul.f32 %v2249_v9, %v2810_v50  ;;  %v950_v24 = vadd.f32 %v2791_v32, %v949_v14 }
 0x1ac   : > { %v1398_v18 = vsel %vm2821_vm10, %v1397_v6, %v1393_v15  ;;  %2256 = vpow2.f32 %v1981_v20  ;;  %vm1406_vm1 = vweird.f32 %v2249_v9  ;;  %v1202_v50 = vor.u32 1.1754944e-38, %v1201_v42 }
 0x1ad   : > { %1641 = vst [vmem:[%s2806_s10 + $0x80] sm:$0xff] %v1398_v18  ;;  %v1179_v21 = vadd.f32 %v2247_v60, %v1178_v16  ;;  %v1402_v22 = vsub.f32 1.0, %v1401_v17  ;;  %v1967_v35 = vmul.f32 -1.442695, %v950_v24  ;;  %vm1407_vm3 = vmor %vm1405_vm0, %vm1406_vm1 }
 0x1ae   : > { %v2251_v25 = vpop.eup %2250  ;;  %v987_v27 = vpop.f32.mrf.mxu3 }
 0x1af   : > { %v2253_v28 = vpop.eup %2252  ;;  %v1183_v29 = vsel %vm1182_vm14, %v2247_v60, %v1179_v21  ;;  %v1403_v30 = vmul.f32 %v2249_v9, %v1402_v22  ;;  %v1191_v31 = vmul.f32 %v2251_v25, %v2817_v62  ;;  %v988_v36 = vadd.f32 %v2791_v32, %v987_v27 }
 0x1b0   : > { %v1188_v33 = vsel %vm1185_vm15, %v1187_v26, %v1183_v29  ;;  %v2844_v34 = vadd.f32 1.0, %v2253_v28  ;;  %v2255_v40 = vpop.eup %2254  ;;  %vm1196_vm4 = vweird.f32 %v2251_v25 }
 0x1b1   : > { %1627 = vst [vmem:[%s2806_s10 + $0x10] sm:$0xff] %v1188_v33  ;;  %v1404_v37 = vadd.f32 %v2249_v9, %v1403_v30  ;;  %v1192_v39 = vsub.f32 1.0, %v1191_v31  ;;  %v2853_v46 = vadd.f32 1.0, %v2255_v40  ;;  %v1982_v49 = vmul.f32 -1.442695, %v988_v36  ;;  %vm1197_vm6 = vmor %vm1195_vm5, %vm1196_vm4 }
 0x1b2   : > { %2258 = vrcp.f32 %v2844_v34  ;;  %v952_v43 = vpop.f32.mrf.mxu1  ;;  %v2257_v47 = vpop.eup %2256  ;;  %v1424_v56 = vand.u32 2147483647, %v2844_v34  ;;  %v1426_v59 = vand.u32 2147483648, %v2844_v34  ;;  %vm1420_vm8 = vweird.f32 %v2844_v34 }
 0x1b3   : > { %v1408_v44 = vsel %vm1407_vm3, %v2249_v9, %v1404_v37  ;;  %v1193_v45 = vmul.f32 %v2251_v25, %v1192_v39  ;;  %2260 = vpow2.f32 %v1967_v35  ;;  %v2859_v52 = vadd.f32 1.0, %v2257_v47 }
 0x1b4   : > { %v1413_v48 = vsel %vm1410_vm2, %v1412_v38, %v1408_v44  ;;  %2262 = vrcp.f32 %v2853_v46  ;;  %v953_v53 = vadd.f32 %v2791_v32, %v952_v43  ;;  %v1214_v62 = vand.u32 2147483647, %v2853_v46 }
 0x1b5   : > { %1642 = vst [vmem:[%s2806_s10 + $0x88] sm:$0xff] %v1413_v48  ;;  %v1194_v51 = vadd.f32 %v2251_v25, %v1193_v45  ;;  %2264 = vpow2.f32 %v1982_v49  ;;  %vm2884_vm9 = vcmp.eq.f32.partialorder %v1424_v56, 8.507059e+37  ;;  %v1216_v6 = vand.u32 2147483648, %v2853_v46 }
 0x1b6   : > { %v989_v54 = vpop.f32.mrf.mxu3  ;;  %2266 = vrcp.f32 %v2859_v52  ;;  %v1968_v0 = vmul.f32 -1.442695, %v953_v53  ;;  %v1427_v8 = vor.u32 1.1754944e-38, %v1426_v59  ;;  %vm1210_vm11 = vweird.f32 %v2853_v46 }
 0x1b7   : > { %v1198_v55 = vsel %vm1197_vm6, %v2251_v25, %v1194_v51  ;;  %v990_v1 = vadd.f32 %v2791_v32, %v989_v54 }
 0x1b8   : > { %v2863_v57 = vpop.eup %2258  ;;  %v1203_v58 = vsel %vm1200_vm7, %v1202_v50, %v1198_v55 }
 0x1b9   : > { %v2261_v60 = vpop.eup %2260  ;;  %1628 = vst [vmem:[%s2806_s10 + $0x18] sm:$0xff] %v1203_v58  ;;  %v1416_v61 = vmul.f32 %v2863_v57, %v2844_v34  ;;  %vm1421_vm10 = vweird.f32 %v2863_v57 }
 0x1ba   : > { %v2876_v63 = vadd.f32 1.0, %v2261_v60  ;;  %v954_v2 = vpop.f32.mrf.mxu1  ;;  %v2881_v3 = vpop.eup %2262 }
 0x1bb   : > { %v1417_v4 = vsub.f32 1.0, %v1416_v61  ;;  %v2265_v7 = vpop.eup %2264  ;;  %v1206_v9 = vmul.f32 %v2881_v3, %v2853_v46  ;;  %v955_v10 = vadd.f32 %v2791_v32, %v954_v2 }
 0x1bc   : > { %2268 = vrcp.f32 %v2876_v63  ;;  %v2898_v12 = vadd.f32 1.0, %v2265_v7 }
 0x1bd   : > { %v1418_v11 = vmul.f32 %v2863_v57, %v1417_v4 }
 0x1be   : > { %2474 = shalt.err (!%p2471_p10)
}
 0x1bf   : > { %s2555_s30 = smov 64   ;;  %s2556_s13 = smov 4   ;;  %v2267_v13 = vpop.eup %2266  ;;  %v1207_v14 = vsub.f32 1.0, %v1206_v9  ;;  %vm2914_vm12 = vcmp.eq.f32.partialorder %v1214_v62, 8.507059e+37  ;;  %2270 = vpow2.f32 %v1968_v0  ;;  %v1983_v16 = vmul.f32 -1.442695, %v990_v1  ;;  %v992_v17 = vpop.f32.mrf.mxu3  ;;  %vm1422_vm14 = vmor %vm1420_vm8, %vm1421_vm10 }
 0x1c0   : > { %2159 = dma.vmem_to_hbm [thread:$0]  (%p2666_p3), %s2879_s12, 2048, %s2889_s15, %s1663_s7, %s2555_s30, %s2555_s30, %s2556_s13   ;;  %v1419_v18 = vadd.f32 %v2863_v57, %v1418_v11  ;;  %v1217_v19 = vor.u32 1.1754944e-38, %v1216_v6  ;;  %v1431_v20 = vmul.f32 %v2267_v13, %v2859_v52  ;;  %vm1435_vm13 = vweird.f32 %v2859_v52 }
 0x1c1   : > { %v1208_v21 = vmul.f32 %v2881_v3, %v1207_v14  ;;  %vm1211_vm15 = vweird.f32 %v2881_v3  ;;  %2272 = vrcp.f32 %v2898_v12  ;;  %v1969_v22 = vmul.f32 -1.442695, %v955_v10  ;;  %s2035_s15 = sshll.u32 %s2615_s25, 8  ;;  %s1675_s16 = sshll.u32 %s2806_s10, 4  ;;  %s1676_s16 = int_to_ptr.vmem [resolvable:$true] %s1675_s16 }
 0x1c2   : > { %v1423_v23 = vsel %vm1422_vm14, %v2863_v57, %v1419_v18  ;;  %v1432_v24 = vsub.f32 1.0, %v1431_v20  ;;  %v1439_v25 = vand.u32 2147483647, %v2859_v52  ;;  %v1441_v26 = vand.u32 2147483648, %v2859_v52  ;;  %v2269_v27 = vpop.eup %2268  ;;  %v957_v31 = vpop.f32.mrf.mxu1  ;;  %vm1212_vm0 = vmor %vm1210_vm11, %vm1211_vm15  ;;  %s1674_s8 = scalar_lea.hbm %s3294_s5, %s2035_s15  ;;  %s1658_s25 = scalar_lea.sflag [#allocation4], %s2699_s9 }
 0x1c3   : > { %v1428_v28 = vsel %vm2884_vm9, %v1427_v8, %v1423_v23  ;;  %v1209_v29 = vadd.f32 %v2881_v3, %v1208_v21  ;;  %2274 = vpow2.f32 %v1983_v16  ;;  %v993_v30 = vadd.f32 %v2791_v32, %v992_v17  ;;  %s1677_s17 = sshll.u32 %s1674_s8, 4  ;;  %s2495_s13 = scalar_lea.hbm %s3294_s5, 512  ;;  %s1678_s17 = int_to_ptr.hbm [resolvable:$true] %s1677_s17 }
 0x1c4   : > { %1643 = vst [vmem:[%s2806_s10 + $0x90] sm:$0xff] %v1428_v28  ;;  %v1433_v33 = vmul.f32 %v2267_v13, %v1432_v24  ;;  %vm1436_vm1 = vweird.f32 %v2267_v13  ;;  %v1221_v34 = vmul.f32 %v2269_v27, %v2876_v63  ;;  %v1229_v35 = vand.u32 2147483647, %v2876_v63  ;;  %s2489_s20 = sshra.s32 %s1678_s17, 4  ;;  %s2490_s20 = int_to_ptr.hbm [resolvable:$true] %s2489_s20 }
 0x1c5   : > { %v2271_v36 = vpop.eup %2270  ;;  %v1213_v37 = vsel %vm1212_vm0, %v2881_v3, %v1209_v29  ;;  %v1231_v38 = vand.u32 2147483648, %v2876_v63  ;;  %2276 = vpow2.f32 %v1969_v22  ;;  %v1984_v39 = vmul.f32 -1.442695, %v993_v30  ;;  %vm1437_vm2 = vmor %vm1435_vm13, %vm1436_vm1  ;;  %s2491_s19 = scalar_lea.hbm %s2490_s20, 256  ;;  %p2496_p5 = scmp.lt.s32.totalorder %s2490_s20, %s3294_s5 }
 0x1c6   : > { %v1218_v40 = vsel %vm2914_vm12, %v1217_v19, %v1213_v37  ;;  %v1434_v41 = vadd.f32 %v2267_v13, %v1433_v33  ;;  %v1222_v42 = vsub.f32 1.0, %v1221_v34  ;;  %v2944_v43 = vadd.f32 1.0, %v2271_v36  ;;  %p2492_p12 = scmp.ne.s32.totalorder %s2490_s20, %s2491_s19  ;;  %p2497_p7 = scmp.lt.s32.totalorder %s2495_s13, %s2491_s19 }
 0x1c7   : > { %v2273_v44 = vpop.eup %2272  ;;  %1629 = vst [vmem:[%s2806_s10 + $0x20] sm:$0xff] %v1218_v40  ;;  %vm1440_vm3 = vcmp.eq.f32.partialorder %v1439_v25, 8.507059e+37  ;;  %v1442_v45 = vor.u32 1.1754944e-38, %v1441_v26  ;;  %2278 = vpow2.f32 %v1984_v39  ;;  %v958_v46 = vadd.f32 %v2791_v32, %v957_v31  ;;  %v994_v47 = vpop.f32.mrf.mxu3 }
 0x1c8   : > { %v1438_v48 = vsel %vm1437_vm2, %v2267_v13, %v1434_v41  ;;  %v1223_v49 = vmul.f32 %v2269_v27, %v1222_v42  ;;  %vm1226_vm4 = vweird.f32 %v2269_v27  ;;  %v1446_v51 = vmul.f32 %v2273_v44, %v2898_v12  ;;  %p2493_p13 = pnand %p2492_p12, %p2666_p3  ;;  %p2498_p1 = por %p2497_p7, %p2496_p5 }
 0x1c9   : > { %v2275_v50 = vpop.eup %2274  ;;  %v1443_v53 = vsel %vm1440_vm3, %v1442_v45, %v1438_v48  ;;  %vm1225_vm5 = vweird.f32 %v2876_v63  ;;  %vm2952_vm6 = vcmp.eq.f32.partialorder %v1229_v35, 8.507059e+37  ;;  %2280 = vrcp.f32 %v2944_v43 }
 0x1ca   : > { %1644 = vst [vmem:[%s2806_s10 + $0x98] sm:$0xff] %v1443_v53  ;;  %v1224_v52 = vadd.f32 %v2269_v27, %v1223_v49  ;;  %v1232_v55 = vor.u32 1.1754944e-38, %v1231_v38  ;;  %v1447_v56 = vsub.f32 1.0, %v1446_v51  ;;  %v2958_v57 = vadd.f32 1.0, %v2275_v50  ;;  %vm1227_vm7 = vmor %vm1225_vm5, %vm1226_vm4  ;;  %v959_v62 = vpop.f32.mrf.mxu1  ;;  %p2494_p0 = pneg %p2493_p13 }
 0x1cb   : > { %v2277_v58 = vpop.eup %2276  ;;  %vm1451_vm8 = vweird.f32 %v2273_v44  ;;  %v1454_v59 = vand.u32 2147483647, %v2898_v12  ;;  %v1456_v60 = vand.u32 2147483648, %v2898_v12  ;;  %v1970_v61 = vmul.f32 -1.442695, %v958_v46 }
 0x1cc   : > { %v1228_v63 = vsel %vm1227_vm7, %v2269_v27, %v1224_v52  ;;  %v1448_v0 = vmul.f32 %v2273_v44, %v1447_v56  ;;  %2282 = vrcp.f32 %v2958_v57  ;;  %v995_v1 = vadd.f32 %v2791_v32, %v994_v47  ;;  %p2499_p4 = pnand %p2498_p1, %p2494_p0 }
 0x1cd   : > { %v2279_v2 = vpop.eup %2278  ;;  %v1233_v3 = vsel %vm2952_vm6, %v1232_v55, %v1228_v63  ;;  %vm1450_vm9 = vweird.f32 %v2898_v12  ;;  %v1244_v4 = vand.u32 2147483647, %v2944_v43  ;;  %v2969_v6 = vadd.f32 1.0, %v2277_v58 }
 0x1ce   : > { %1630 = vst [vmem:[%s2806_s10 + $0x28] sm:$0xff] %v1233_v3  ;;  %v1449_v5 = vadd.f32 %v2273_v44, %v1448_v0  ;;  %v2971_v7 = vadd.f32 1.0, %v2279_v2  ;;  %2284 = vpow2.f32 %v1970_v61  ;;  %vm1452_vm10 = vmor %vm1450_vm9, %vm1451_vm8  ;;  %vm1455_vm11 = vcmp.eq.f32.partialorder %v1454_v59, 8.507059e+37 }
 0x1cf   : > { %v2281_v8 = vpop.eup %2280  ;;  %v1457_v9 = vor.u32 1.1754944e-38, %v1456_v60  ;;  %v1246_v10 = vand.u32 2147483648, %v2944_v43  ;;  %v1469_v11 = vand.u32 2147483647, %v2958_v57  ;;  %v997_v12 = vpop.f32.mrf.mxu3  ;;  %2286 = vrcp.f32 %v2969_v6 }
 0x1d0   : > { %v1453_v13 = vsel %vm1452_vm10, %v2273_v44, %v1449_v5  ;;  %v1236_v14 = vmul.f32 %v2281_v8, %v2944_v43  ;;  %v1985_v15 = vmul.f32 -1.442695, %v995_v1  ;;  %vm1240_vm12 = vweird.f32 %v2944_v43 }
 0x1d1   : > { %v1458_v16 = vsel %vm1455_vm11, %v1457_v9, %v1453_v13  ;;  %v1471_v17 = vand.u32 2147483648, %v2958_v57  ;;  %vm2981_vm13 = vcmp.eq.f32.partialorder %v1244_v4, 8.507059e+37  ;;  %2288 = vrcp.f32 %v2971_v7 }
 0x1d2   : > { %v2283_v18 = vpop.eup %2282  ;;  %1645 = vst [vmem:[%s2806_s10 + $0xa0] sm:$0xff] %v1458_v16  ;;  %v1237_v19 = vsub.f32 1.0, %v1236_v14  ;;  %v960_v21 = vadd.f32 %v2791_v32, %v959_v62  ;;  %v1247_v22 = vor.u32 1.1754944e-38, %v1246_v10  ;;  %vm1465_vm14 = vweird.f32 %v2958_v57  ;;  %v962_v25 = vpop.f32.mrf.mxu1 }
 0x1d3   : > { %v1461_v23 = vmul.f32 %v2283_v18, %v2958_v57  ;;  %vm2989_vm15 = vcmp.eq.f32.partialorder %v1469_v11, 8.507059e+37  ;;  %vm1241_vm0 = vweird.f32 %v2281_v8  ;;  %v1259_v28 = vand.u32 2147483647, %v2969_v6 }
 0x1d4   : > { %v2285_v26 = vpop.eup %2284  ;;  %v1238_v27 = vmul.f32 %v2281_v8, %v1237_v19  ;;  %2290 = vpow2.f32 %v1985_v15  ;;  %v1472_v30 = vor.u32 1.1754944e-38, %v1471_v17  ;;  %vm1255_vm1 = vweird.f32 %v2969_v6  ;;  %vm1242_vm2 = vmor %vm1240_vm12, %vm1241_vm0 }
 0x1d5   : > { %v1462_v29 = vsub.f32 1.0, %v1461_v23  ;;  %v2995_v31 = vadd.f32 1.0, %v2285_v26  ;;  %v2287_v33 = vpop.eup %2286  ;;  %v1261_v35 = vand.u32 2147483648, %v2969_v6  ;;  %v1484_v36 = vand.u32 2147483647, %v2971_v7 }
 0x1d6   : > { %v1239_v34 = vadd.f32 %v2281_v8, %v1238_v27  ;;  %v1971_v37 = vmul.f32 -1.442695, %v960_v21  ;;  %vm1466_vm3 = vweird.f32 %v2283_v18  ;;  %v1251_v39 = vmul.f32 %v2287_v33, %v2969_v6 }
 0x1d7   : > { %v1463_v38 = vmul.f32 %v2283_v18, %v1462_v29  ;;  %vm1480_vm4 = vweird.f32 %v2971_v7  ;;  %2292 = vrcp.f32 %v2995_v31  ;;  %v999_v40 = vpop.f32.mrf.mxu3  ;;  %v2289_v41 = vpop.eup %2288  ;;  %vm3004_vm5 = vcmp.eq.f32.partialorder %v1259_v28, 8.507059e+37  ;;  %vm1467_vm6 = vmor %vm1465_vm14, %vm1466_vm3 }
 0x1d8   : > { %v1243_v42 = vsel %vm1242_vm2, %v2281_v8, %v1239_v34  ;;  %v998_v45 = vadd.f32 %v2791_v32, %v997_v12  ;;  %v963_v43 = vadd.f32 %v2791_v32, %v962_v25  ;;  %v1252_v48 = vsub.f32 1.0, %v1251_v39 }
 0x1d9   : > { %v1248_v46 = vsel %vm2981_vm13, %v1247_v22, %v1243_v42  ;;  %v1464_v47 = vadd.f32 %v2283_v18, %v1463_v38  ;;  %v1476_v49 = vmul.f32 %v2289_v41, %v2971_v7  ;;  %vm1256_vm7 = vweird.f32 %v2287_v33 }
 0x1da   : > { %v2291_v51 = vpop.eup %2290  ;;  %1631 = vst [vmem:[%s2806_s10 + $0x30] sm:$0xff] %v1248_v46  ;;  %v1262_v50 = vor.u32 1.1754944e-38, %v1261_v35  ;;  %v1486_v53 = vand.u32 2147483648, %v2971_v7  ;;  %2294 = vpow2.f32 %v1971_v37  ;;  %v1253_v52 = vmul.f32 %v2287_v33, %v1252_v48  ;;  %v964_v58 = vpop.f32.mrf.mxu1  ;;  %vm1257_vm9 = vmor %vm1255_vm1, %vm1256_vm7 }
 0x1db   : > { %v1468_v54 = vsel %vm1467_vm6, %v2283_v18, %v1464_v47  ;;  %v1477_v55 = vsub.f32 1.0, %v1476_v49  ;;  %v3018_v56 = vadd.f32 1.0, %v2291_v51  ;;  %vm1481_vm8 = vweird.f32 %v2289_v41 }
 0x1dc   : > { %v1473_v59 = vsel %vm2989_vm15, %v1472_v30, %v1468_v54  ;;  %v1986_v60 = vmul.f32 -1.442695, %v998_v45  ;;  %v1000_v57 = vadd.f32 %v2791_v32, %v999_v40  ;;  %v1254_v62 = vadd.f32 %v2287_v33, %v1253_v52  ;;  %vm1482_vm11 = vmor %vm1480_vm4, %vm1481_vm8 }
 0x1dd   : > { %v2293_v61 = vpop.eup %2292  ;;  %1646 = vst [vmem:[%s2806_s10 + $0xa8] sm:$0xff] %v1473_v59  ;;  %v1478_v63 = vmul.f32 %v2289_v41, %v1477_v55  ;;  %2296 = vrcp.f32 %v3018_v56  ;;  %v1972_v0 = vmul.f32 -1.442695, %v963_v43  ;;  %vm3028_vm10 = vcmp.eq.f32.partialorder %v1484_v36, 8.507059e+37 }
 0x1de   : > { %v1487_v2 = vor.u32 1.1754944e-38, %v1486_v53  ;;  %v1266_v3 = vmul.f32 %v2293_v61, %v2995_v31  ;;  %v1274_v4 = vand.u32 2147483647, %v2995_v31  ;;  %v1258_v5 = vsel %vm1257_vm9, %v2287_v33, %v1254_v62 }
 0x1df   : > { %v1479_v8 = vadd.f32 %v2289_v41, %v1478_v63  ;;  %2298 = vpow2.f32 %v1986_v60  ;;  %v1987_v9 = vmul.f32 -1.442695, %v1000_v57  ;;  %v1002_v10 = vpop.f32.mrf.mxu3  ;;  %v1263_v6 = vsel %vm3004_vm5, %v1262_v50, %v1258_v5 }
 0x1e0   : > { %v2295_v11 = vpop.eup %2294  ;;  %v1267_v12 = vsub.f32 1.0, %v1266_v3  ;;  %vm1271_vm12 = vweird.f32 %v2293_v61  ;;  %v1276_v13 = vand.u32 2147483648, %v2995_v31  ;;  %1632 = vst [vmem:[%s2806_s10 + $0x38] sm:$0xff] %v1263_v6  ;;  %2300 = vpow2.f32 %v1972_v0 }
 0x1e1   : > { %v1483_v14 = vsel %vm1482_vm11, %v2289_v41, %v1479_v8  ;;  %v3041_v15 = vadd.f32 1.0, %v2295_v11  ;;  %v965_v16 = vadd.f32 %v2791_v32, %v964_v58  ;;  %2302 = vpow2.f32 %v1987_v9 }
 0x1e2   : > { %v1488_v17 = vsel %vm3028_vm10, %v1487_v2, %v1483_v14  ;;  %v1268_v18 = vmul.f32 %v2293_v61, %v1267_v12  ;;  %v1003_v19 = vadd.f32 %v2791_v32, %v1002_v10  ;;  %vm1270_vm13 = vweird.f32 %v2995_v31  ;;  %v967_v20 = vpop.f32.mrf.mxu1 }
 0x1e3   : > { %v2297_v7 = vpop.eup %2296  ;;  %1647 = vst [vmem:[%s2806_s10 + $0xb0] sm:$0xff] %v1488_v17  ;;  %2304 = vrcp.f32 %v3041_v15  ;;  %vm1275_vm14 = vcmp.eq.f32.partialorder %v1274_v4, 8.507059e+37  ;;  %v1973_v23 = vmul.f32 -1.442695, %v965_v16  ;;  %vm1272_vm15 = vmor %vm1270_vm13, %vm1271_vm12  ;;  %v1277_v25 = vor.u32 1.1754944e-38, %v1276_v13 }
 0x1e4   : > { %v1269_v21 = vadd.f32 %v2293_v61, %v1268_v18  ;;  %v1491_v22 = vmul.f32 %v2297_v7, %v3018_v56  ;;  %v1499_v26 = vand.u32 2147483647, %v3018_v56  ;;  %v1988_v27 = vmul.f32 -1.442695, %v1003_v19 }
 0x1e5   : > { %v2299_v24 = vpop.eup %2298  ;;  %v968_v28 = vadd.f32 %v2791_v32, %v967_v20  ;;  %2306 = vpow2.f32 %v1973_v23  ;;  %v1501_v35 = vand.u32 2147483648, %v3018_v56  ;;  %vm1496_vm0 = vweird.f32 %v2297_v7 }
 0x1e6   : > { %v1273_v29 = vsel %vm1272_vm15, %v2293_v61, %v1269_v21  ;;  %v1492_v30 = vsub.f32 1.0, %v1491_v22  ;;  %v3054_v31 = vadd.f32 1.0, %v2299_v24  ;;  %v2301_v33 = vpop.eup %2300  ;;  %2308 = vpow2.f32 %v1988_v27 }
 0x1e7   : > { %v1278_v34 = vsel %vm1275_vm14, %v1277_v25, %v1273_v29  ;;  %v1974_v36 = vmul.f32 -1.442695, %v968_v28  ;;  %v3057_v37 = vpop.f32.mrf.mxu3  ;;  %v2303_v38 = vpop.eup %2302  ;;  %v1289_v40 = vand.u32 2147483647, %v3041_v15  ;;  %vm1495_vm1 = vweird.f32 %v3018_v56 }
 0x1e8   : > { %1633 = vst [vmem:[%s2806_s10 + $0x40] sm:$0xff] %v1278_v34  ;;  %v1493_v39 = vmul.f32 %v2297_v7, %v1492_v30  ;;  %2310 = vrcp.f32 %v3054_v31  ;;  %v1291_v42 = vand.u32 2147483648, %v3041_v15  ;;  %v3064_v44 = vadd.f32 1.0, %v2301_v33  ;;  %vm1497_vm3 = vmor %vm1495_vm1, %vm1496_vm0 }
 0x1e9   : > { %v2305_v41 = vpop.eup %2304  ;;  %v3066_v45 = vadd.f32 1.0, %v2303_v38  ;;  %vm1500_vm2 = vcmp.eq.f32.partialorder %v1499_v26, 8.507059e+37  ;;  %2312 = vpow2.f32 %v1974_v36  ;;  %v1502_v47 = vor.u32 1.1754944e-38, %v1501_v35 }
 0x1ea   : > { %v1494_v43 = vadd.f32 %v2297_v7, %v1493_v39  ;;  %v1281_v46 = vmul.f32 %v2305_v41, %v3041_v15  ;;  %vm1285_vm4 = vweird.f32 %v3041_v15  ;;  %v1514_v48 = vand.u32 2147483647, %v3054_v31  ;;  %v3072_v49 = vpop.f32.mrf.mxu1 }
 0x1eb   : > { %2314 = vrcp.f32 %v3064_v44  ;;  %v2307_v51 = vpop.eup %2306  ;;  %vm3074_vm5 = vcmp.eq.f32.partialorder %v1289_v40, 8.507059e+37  ;;  %v1292_v56 = vor.u32 1.1754944e-38, %v1291_v42  ;;  %vm1510_vm6 = vweird.f32 %v3054_v31 }
 0x1ec   : > { %v1498_v50 = vsel %vm1497_vm3, %v2297_v7, %v1494_v43  ;;  %v1282_v53 = vsub.f32 1.0, %v1281_v46  ;;  %2316 = vrcp.f32 %v3066_v45  ;;  %v2309_v52 = vpop.eup %2308  ;;  %v1516_v58 = vand.u32 2147483648, %v3054_v31 }
 0x1ed   : > { %v1503_v55 = vsel %vm1500_vm2, %v1502_v47, %v1498_v50  ;;  %vm1286_vm7 = vweird.f32 %v2305_v41  ;;  %v1304_v57 = vand.u32 2147483647, %v3064_v44  ;;  %v3083_v61 = vadd.f32 1.0, %v2307_v51 }
 0x1ee   : > { %v2311_v59 = vpop.eup %2310  ;;  %1648 = vst [vmem:[%s2806_s10 + $0xb8] sm:$0xff] %v1503_v55  ;;  %v1283_v60 = vmul.f32 %v2305_v41, %v1282_v53  ;;  %vm3086_vm8 = vcmp.eq.f32.partialorder %v1514_v48, 8.507059e+37  ;;  %v1306_v0 = vand.u32 2147483648, %v3064_v44  ;;  %v3091_v1 = vadd.f32 1.0, %v2309_v52  ;;  %vm1287_vm9 = vmor %vm1285_vm4, %vm1286_vm7 }
 0x1ef   : > { %v1506_v62 = vmul.f32 %v2311_v59, %v3054_v31  ;;  %v3093_v2 = vpop.f32.mrf.mxu3  ;;  %v2313_v3 = vpop.eup %2312  ;;  %v1529_v5 = vand.u32 2147483647, %v3066_v45  ;;  %v1531_v8 = vand.u32 2147483648, %v3066_v45  ;;  %2318 = vrcp.f32 %v3083_v61 }
 0x1f0   : > { %v1284_v4 = vadd.f32 %v2305_v41, %v1283_v60  ;;  %v1517_v11 = vor.u32 1.1754944e-38, %v1516_v58  ;;  %vm1300_vm10 = vweird.f32 %v3064_v44  ;;  %2320 = vrcp.f32 %v3091_v1  ;;  %v3156_v58 = vld [vmem:[%s3293_s4] ss:$0 sm:$0xff] }
 0x1f1   : > { %v2315_v9 = vpop.eup %2314  ;;  %v1507_v10 = vsub.f32 1.0, %v1506_v62  ;;  %vm1511_vm11 = vweird.f32 %v2311_v59  ;;  %vm3103_vm12 = vcmp.eq.f32.partialorder %v1304_v57, 8.507059e+37  ;;  %vm1525_vm13 = vweird.f32 %v3066_v45 }
 0x1f2   : > { %v2317_v6 = vpop.eup %2316  ;;  %v1288_v12 = vsel %vm1287_vm9, %v2305_v41, %v1284_v4  ;;  %v1296_v13 = vmul.f32 %v2315_v9, %v3064_v44  ;;  %v1319_v18 = vand.u32 2147483647, %v3083_v61  ;;  %v972_v19 = vpop.f32.mrf.mxu1  ;;  %v1307_v20 = vor.u32 1.1754944e-38, %v1306_v0  ;;  %vm1512_vm0 = vmor %vm1510_vm6, %vm1511_vm11 }
 0x1f3   : > { %v1293_v15 = vsel %vm3074_vm5, %v1292_v56, %v1288_v12  ;;  %v1508_v16 = vmul.f32 %v2311_v59, %v1507_v10  ;;  %v1521_v17 = vmul.f32 %v2317_v6, %v3066_v45  ;;  %vm3113_vm14 = vcmp.eq.f32.partialorder %v1529_v5, 8.507059e+37 }
 0x1f4   : > { %1634 = vst [vmem:[%s2806_s10 + $0x48] sm:$0xff] %v1293_v15  ;;  %v1297_v7 = vsub.f32 1.0, %v1296_v13  ;;  %v1532_v22 = vor.u32 1.1754944e-38, %v1531_v8  ;;  %vm1315_vm15 = vweird.f32 %v3083_v61  ;;  %v1321_v25 = vand.u32 2147483648, %v3083_v61 }
 0x1f5   : > { %v1509_v23 = vadd.f32 %v2311_v59, %v1508_v16  ;;  %v1522_v24 = vsub.f32 1.0, %v1521_v17  ;;  %v3119_v26 = vadd.f32 1.0, %v2313_v3  ;;  %v2319_v27 = vpop.eup %2318  ;;  %vm1301_vm1 = vweird.f32 %v2315_v9 }
 0x1f6   : > { %v1298_v28 = vmul.f32 %v2315_v9, %v1297_v7  ;;  %vm1526_vm2 = vweird.f32 %v2317_v6  ;;  %vm1540_vm3 = vweird.f32 %v3091_v1  ;;  %v2321_v29 = vpop.eup %2320  ;;  %v1311_v34 = vmul.f32 %v2319_v27, %v3083_v61  ;;  %vm1302_vm5 = vmor %vm1300_vm10, %vm1301_vm1 }
 0x1f7   : > { %v1513_v30 = vsel %vm1512_vm0, %v2311_v59, %v1509_v23  ;;  %v1523_v33 = vmul.f32 %v2317_v6, %v1522_v24  ;;  %vm3126_vm4 = vcmp.eq.f32.partialorder %v1319_v18, 8.507059e+37  ;;  %v1546_v36 = vand.u32 2147483648, %v3091_v1  ;;  %v1009_v38 = vpop.f32.mrf.mxu3  ;;  %vm1527_vm6 = vmor %vm1525_vm13, %vm1526_vm2 }
 0x1f8   : > { %v1518_v31 = vsel %vm3086_vm8, %v1517_v11, %v1513_v30  ;;  %v1299_v39 = vadd.f32 %v2315_v9, %v1298_v28  ;;  %v1536_v40 = vmul.f32 %v2321_v29, %v3091_v1  ;;  %v1005_v41 = vadd.f32 %v2791_v32, %v3057_v37 }
 0x1f9   : > { %1649 = vst [vmem:[%s2806_s10 + $0xc0] sm:$0xff] %v1518_v31  ;;  %v1524_v42 = vadd.f32 %v2317_v6, %v1523_v33  ;;  %v1312_v43 = vsub.f32 1.0, %v1311_v34  ;;  %2322 = vrcp.f32 %v3119_v26  ;;  %v970_v46 = vadd.f32 %v2791_v32, %v3072_v49 }
 0x1fa   : > { %v1303_v47 = vsel %vm1302_vm5, %v2315_v9, %v1299_v39  ;;  %v1322_v37 = vor.u32 1.1754944e-38, %v1321_v25  ;;  %v1537_v48 = vsub.f32 1.0, %v1536_v40  ;;  %v1544_v51 = vand.u32 2147483647, %v3091_v1  ;;  %v974_v52 = vpop.f32.mrf.mxu1 }
 0x1fb   : > { %v1308_v44 = vsel %vm3103_vm12, %v1307_v20, %v1303_v47  ;;  %v1528_v50 = vsel %vm1527_vm6, %v2317_v6, %v1524_v42  ;;  %v1313_v53 = vmul.f32 %v2319_v27, %v1312_v43  ;;  %vm1316_vm7 = vweird.f32 %v2319_v27 }
 0x1fc   : > { %1635 = vst [vmem:[%s2806_s10 + $0x50] sm:$0xff] %v1308_v44  ;;  %v1533_v32 = vsel %vm3113_vm14, %v1532_v22, %v1528_v50  ;;  %v1538_v49 = vmul.f32 %v2321_v29, %v1537_v48  ;;  %vm1541_vm8 = vweird.f32 %v2321_v29  ;;  %v1989_v54 = vmul.f32 -1.442695, %v1005_v41  ;;  %vm1317_vm9 = vmor %vm1315_vm15, %vm1316_vm7 }
 0x1fd   : > { %1650 = vst [vmem:[%s2806_s10 + $0xc8] sm:$0xff] %v1533_v32  ;;  %v1314_v45 = vadd.f32 %v2319_v27, %v1313_v53  ;;  %v1547_v55 = vor.u32 1.1754944e-38, %v1546_v36  ;;  %v1975_v56 = vmul.f32 -1.442695, %v970_v46  ;;  %v1008_v59 = vadd.f32 %v3156_v58, %v3093_v2  ;;  %vm1542_vm10 = vmor %vm1540_vm3, %vm1541_vm8 }
 0x1fe   : > { %v1539_v60 = vadd.f32 %v2321_v29, %v1538_v49  ;;  %2324 = vpow2.f32 %v1989_v54  ;;  %v973_v57 = vadd.f32 %v3156_v58, %v972_v19  ;;  %v1010_v62 = vadd.f32 %v3156_v58, %v1009_v38 }
 0x1ff   : > { %v2323_v63 = vpop.eup %2322  ;;  %v1318_v0 = vsel %vm1317_vm9, %v2319_v27, %v1314_v45  ;;  %2326 = vpow2.f32 %v1975_v56  ;;  %v1990_v3 = vmul.f32 -1.442695, %v1008_v59  ;;  %v975_v2 = vadd.f32 %v3156_v58, %v974_v52  ;;  %v1012_v61 = vpop.f32.mrf.mxu3 }
 0x200   : > { %v1323_v4 = vsel %vm3126_vm4, %v1322_v37, %v1318_v0  ;;  %v1543_v5 = vsel %vm1542_vm10, %v2321_v29, %v1539_v60  ;;  %vm1545_vm11 = vcmp.eq.f32.partialorder %v1544_v51, 8.507059e+37  ;;  %v1326_v8 = vmul.f32 %v2323_v63, %v3119_v26 }
 0x201   : > { %1636 = vst [vmem:[%s2806_s10 + $0x58] sm:$0xff] %v1323_v4  ;;  %v1548_v9 = vsel %vm1545_vm11, %v1547_v55, %v1543_v5  ;;  %2328 = vpow2.f32 %v1990_v3  ;;  %v1976_v10 = vmul.f32 -1.442695, %v973_v57  ;;  %v1991_v11 = vmul.f32 -1.442695, %v1010_v62 }
 0x202   : > { %1651 = vst [vmem:[%s2806_s10 + $0xd0] sm:$0xff] %v1548_v9  ;;  %v1327_v1 = vsub.f32 1.0, %v1326_v8  ;;  %v1977_v6 = vmul.f32 -1.442695, %v975_v2  ;;  %v1013_v12 = vadd.f32 %v3156_v58, %v1012_v61  ;;  %v1336_v13 = vand.u32 2147483648, %v3119_v26 }
 0x203   : > { %2330 = vpow2.f32 %v1976_v10  ;;  %vm1331_vm12 = vweird.f32 %v2323_v63  ;;  %v1334_v16 = vand.u32 2147483647, %v3119_v26  ;;  %vm1330_vm13 = vweird.f32 %v3119_v26 }
 0x204   : > { %v2325_v14 = vpop.eup %2324  ;;  %v1328_v15 = vmul.f32 %v2323_v63, %v1327_v1  ;;  %2332 = vpow2.f32 %v1991_v11  ;;  %v1992_v19 = vmul.f32 -1.442695, %v1013_v12  ;;  %vm1332_vm14 = vmor %vm1330_vm13, %vm1331_vm12  ;;  %v1337_v22 = vor.u32 1.1754944e-38, %v1336_v13 }
 0x205   : > { %v2327_v17 = vpop.eup %2326  ;;  %v1140_v18 = vadd.f32 1.0, %v2325_v14  ;;  %2334 = vpow2.f32 %v1977_v6  ;;  %vm1335_vm15 = vcmp.eq.f32.partialorder %v1334_v16, 8.507059e+37 }
 0x206   : > { %v1329_v7 = vadd.f32 %v2323_v63, %v1328_v15  ;;  %v3177_v20 = vadd.f32 1.0, %v2327_v17 }
 0x207   : > { %v2329_v21 = vpop.eup %2328  ;;  %2336 = vrcp.f32 %v1140_v18  ;;  %v1559_v26 = vand.u32 2147483647, %v1140_v18  ;;  %v1561_v30 = vand.u32 2147483648, %v1140_v18  ;;  %v1014_v31 = vpop.f32.mrf.mxu3  ;;  %vm1555_vm0 = vweird.f32 %v1140_v18 }
 0x208   : > { %v1333_v23 = vsel %vm1332_vm14, %v2323_v63, %v1329_v7  ;;  %2338 = vrcp.f32 %v3177_v20  ;;  %v3181_v28 = vadd.f32 1.0, %v2329_v21  ;;  %v1349_v33 = vand.u32 2147483647, %v3177_v20 }
 0x209   : > { %v2331_v24 = vpop.eup %2330  ;;  %v1338_v25 = vsel %vm1335_vm15, %v1337_v22, %v1333_v23  ;;  %2340 = vpow2.f32 %v1992_v19  ;;  %v1351_v35 = vand.u32 2147483648, %v3177_v20  ;;  %vm1345_vm1 = vweird.f32 %v3177_v20 }
 0x20a   : > { %v2333_v27 = vpop.eup %2332  ;;  %1637 = vst [vmem:[%s2806_s10 + $0x60] sm:$0xff] %v1338_v25  ;;  %v3183_v29 = vadd.f32 1.0, %v2331_v24  ;;  %2342 = vrcp.f32 %v3181_v28  ;;  %vm3192_vm2 = vcmp.eq.f32.partialorder %v1559_v26, 8.507059e+37  ;;  %v1562_v43 = vor.u32 1.1754944e-38, %v1561_v30 }
 0x20b   : > { %v2335_v34 = vpop.eup %2334  ;;  %v3188_v36 = vadd.f32 1.0, %v2333_v27  ;;  %vm3197_vm3 = vcmp.eq.f32.partialorder %v1349_v33, 8.507059e+37  ;;  %v1352_v48 = vor.u32 1.1754944e-38, %v1351_v35  ;;  %v1015_v51 = vadd.f32 %v3156_v58, %v1014_v31 }
 0x20c   : > { %2344 = vrcp.f32 %v3183_v29  ;;  %vm1570_vm4 = vweird.f32 %v3181_v28  ;;  %v1574_v50 = vand.u32 2147483647, %v3181_v28  ;;  %v3205_v53 = vadd.f32 1.0, %v2335_v34 }
 0x20d   : > { %v2337_v38 = vpop.eup %2336  ;;  %2346 = vrcp.f32 %v3188_v36  ;;  %v1576_v54 = vand.u32 2147483648, %v3181_v28  ;;  %vm1360_vm7 = vweird.f32 %v3183_v29  ;;  %v1364_v60 = vand.u32 2147483647, %v3183_v29 }
 0x20e   : > { %v2339_v39 = vpop.eup %2338  ;;  %v1551_v40 = vmul.f32 %v2337_v38, %v1140_v18  ;;  %vm1556_vm5 = vweird.f32 %v2337_v38  ;;  %2348 = vrcp.f32 %v3205_v53  ;;  %v1366_v63 = vand.u32 2147483648, %v3183_v29 }
 0x20f   : > { %v2341_v41 = vpop.eup %2340  ;;  %v1341_v46 = vmul.f32 %v2339_v39, %v3177_v20  ;;  %vm1346_vm6 = vweird.f32 %v2339_v39  ;;  %vm1557_vm8 = vmor %vm1555_vm0, %vm1556_vm5  ;;  %v1993_v0 = vmul.f32 -1.442695, %v1015_v51  ;;  %vm3226_vm11 = vcmp.eq.f32.partialorder %v1574_v50, 8.507059e+37 }
 0x210   : > { %v1552_v37 = vsub.f32 1.0, %v1551_v40  ;;  %v2343_v32 = vpop.eup %2342  ;;  %v3208_v52 = vadd.f32 1.0, %v2341_v41  ;;  %vm1347_vm9 = vmor %vm1345_vm1, %vm1346_vm6  ;;  %v1577_v12 = vor.u32 1.1754944e-38, %v1576_v54  ;;  %v1367_v13 = vor.u32 1.1754944e-38, %v1366_v63 }
 0x211   : > { %v1342_v44 = vsub.f32 1.0, %v1341_v46  ;;  %v1566_v56 = vmul.f32 %v2343_v32, %v3181_v28  ;;  %vm1571_vm10 = vweird.f32 %v2343_v32  ;;  %v1589_v17 = vand.u32 2147483647, %v3188_v36 }
 0x212   : > { %v1553_v49 = vmul.f32 %v2337_v38, %v1552_v37  ;;  %v2345_v45 = vpop.eup %2344  ;;  %2350 = vrcp.f32 %v3208_v52  ;;  %vm1572_vm13 = vmor %vm1570_vm4, %vm1571_vm10  ;;  %v1591_v18 = vand.u32 2147483648, %v3188_v36  ;;  %vm1365_vm0 = vcmp.eq.f32.partialorder %v1364_v60, 8.507059e+37 }
 0x213   : > { %v1343_v55 = vmul.f32 %v2339_v39, %v1342_v44  ;;  %v1356_v59 = vmul.f32 %v2345_v45, %v3183_v29  ;;  %v1567_v62 = vsub.f32 1.0, %v1566_v56  ;;  %v2347_v3 = vpop.eup %2346  ;;  %vm1361_vm12 = vweird.f32 %v2345_v45 }
 0x214   : > { %v1554_v58 = vadd.f32 %v2337_v38, %v1553_v49  ;;  %v1581_v9 = vmul.f32 %v2347_v3, %v3188_v36  ;;  %v2349_v15 = vpop.eup %2348  ;;  %2352 = vpow2.f32 %v1993_v0  ;;  %vm1362_vm14 = vmor %vm1360_vm7, %vm1361_vm12  ;;  %vm1586_vm15 = vweird.f32 %v2347_v3 }
 0x215   : > { %v1344_v57 = vadd.f32 %v2339_v39, %v1343_v55  ;;  %v1357_v61 = vsub.f32 1.0, %v1356_v59  ;;  %v1568_v8 = vmul.f32 %v2343_v32, %v1567_v62  ;;  %v1371_v20 = vmul.f32 %v2349_v15, %v3205_v53 }
 0x216   : > { %v1558_v2 = vsel %vm1557_vm8, %v2337_v38, %v1554_v58  ;;  %v1582_v14 = vsub.f32 1.0, %v1581_v9  ;;  %vm1585_vm1 = vweird.f32 %v3188_v36  ;;  %v1592_v29 = vor.u32 1.1754944e-38, %v1591_v18 }
 0x217   : > { %v1563_v4 = vsel %vm3192_vm2, %v1562_v43, %v1558_v2  ;;  %v1348_v5 = vsel %vm1347_vm9, %v2339_v39, %v1344_v57  ;;  %v1358_v1 = vmul.f32 %v2345_v45, %v1357_v61  ;;  %v1569_v6 = vadd.f32 %v2343_v32, %v1568_v8  ;;  %vm1587_vm2 = vmor %vm1585_vm1, %vm1586_vm15 }
 0x218   : > { %1652 = vst [vmem:[%s2806_s10 + $0xd8] sm:$0xff] %v1563_v4  ;;  %v1353_v10 = vsel %vm3197_vm3, %v1352_v48, %v1348_v5  ;;  %v1583_v7 = vmul.f32 %v2347_v3, %v1582_v14  ;;  %v2351_v21 = vpop.eup %2350  ;;  %v1372_v27 = vsub.f32 1.0, %v1371_v20  ;;  %vm1590_vm3 = vcmp.eq.f32.partialorder %v1589_v17, 8.507059e+37 }
 0x219   : > { %1638 = vst [vmem:[%s2806_s10 + $0x68] sm:$0xff] %v1353_v10  ;;  %v1359_v16 = vadd.f32 %v2345_v45, %v1358_v1  ;;  %v1573_v19 = vsel %vm1572_vm13, %v2343_v32, %v1569_v6  ;;  %v1596_v28 = vmul.f32 %v2351_v21, %v3208_v52  ;;  %v1379_v26 = vand.u32 2147483647, %v3205_v53 }
 0x21a   : > { %v1578_v22 = vsel %vm3226_vm11, %v1577_v12, %v1573_v19  ;;  %v1584_v25 = vadd.f32 %v2347_v3, %v1583_v7  ;;  %v1381_v30 = vand.u32 2147483648, %v3205_v53  ;;  %v1373_v34 = vmul.f32 %v2349_v15, %v1372_v27  ;;  %v2353_v36 = vpop.eup %2352 }
 0x21b   : > { %v1363_v23 = vsel %vm1362_vm14, %v2345_v45, %v1359_v16  ;;  %1653 = vst [vmem:[%s2806_s10 + $0xe0] sm:$0xff] %v1578_v22  ;;  %vm1376_vm4 = vweird.f32 %v2349_v15  ;;  %v1597_v35 = vsub.f32 1.0, %v1596_v28  ;;  %vm1375_vm5 = vweird.f32 %v3205_v53 }
 0x21c   : > { %v1368_v24 = vsel %vm1365_vm0, %v1367_v13, %v1363_v23  ;;  %v1588_v33 = vsel %vm1587_vm2, %v2347_v3, %v1584_v25  ;;  %v1604_v31 = vand.u32 2147483647, %v3208_v52  ;;  %v1606_v39 = vand.u32 2147483648, %v3208_v52  ;;  %vm1377_vm7 = vmor %vm1375_vm5, %vm1376_vm4 }
 0x21d   : > { %1639 = vst [vmem:[%s2806_s10 + $0x70] sm:$0xff] %v1368_v24  ;;  %v1593_v38 = vsel %vm1590_vm3, %v1592_v29, %v1588_v33  ;;  %v1374_v40 = vadd.f32 %v2349_v15, %v1373_v34  ;;  %v1598_v41 = vmul.f32 %v2351_v21, %v1597_v35  ;;  %vm1601_vm6 = vweird.f32 %v2351_v21 }
 0x21e   : > { %1654 = vst [vmem:[%s2806_s10 + $0xe8] sm:$0xff] %v1593_v38  ;;  %v1144_v42 = vadd.f32 1.0, %v2353_v36  ;;  %vm1380_vm8 = vcmp.eq.f32.partialorder %v1379_v26, 8.507059e+37  ;;  %v1382_v43 = vor.u32 1.1754944e-38, %v1381_v30  ;;  %vm1600_vm9 = vweird.f32 %v3208_v52 }
 0x21f   : > { %v1378_v46 = vsel %vm1377_vm7, %v2349_v15, %v1374_v40  ;;  %v1599_v47 = vadd.f32 %v2351_v21, %v1598_v41  ;;  %vm1602_vm10 = vmor %vm1600_vm9, %vm1601_vm6  ;;  %v1607_v48 = vor.u32 1.1754944e-38, %v1606_v39  ;;  %vm1605_vm11 = vcmp.eq.f32.partialorder %v1604_v31, 8.507059e+37 }
 0x220   : > { %2354 = vrcp.f32 %v1144_v42  ;;  %v1383_v37 = vsel %vm1380_vm8, %v1382_v43, %v1378_v46  ;;  %v1621_v49 = vand.u32 2147483648, %v1144_v42  ;;  %v1619_v52 = vand.u32 2147483647, %v1144_v42 }
 0x221   : > { %1640 = vst [vmem:[%s2806_s10 + $0x78] sm:$0xff] %v1383_v37  ;;  %v1603_v51 = vsel %vm1602_vm10, %v2351_v21, %v1599_v47  ;;  %vm1615_vm13 = vweird.f32 %v1144_v42 }
 0x222   : > { %v1608_v44 = vsel %vm1605_vm11, %v1607_v48, %v1603_v51  ;;  %v1622_v55 = vor.u32 1.1754944e-38, %v1621_v49  ;;  %vm1620_vm15 = vcmp.eq.f32.partialorder %v1619_v52, 8.507059e+37 }
 0x223   : > { %1655 = vst [vmem:[%s2806_s10 + $0xf0] sm:$0xff] %v1608_v44 }
 0x226   : > { %v2355_v50 = vpop.eup %2354 }
 0x227   : > { %v1611_v53 = vmul.f32 %v2355_v50, %v1144_v42  ;;  %vm1616_vm12 = vweird.f32 %v2355_v50 }
 0x228   : > { %vm1617_vm14 = vmor %vm1615_vm13, %vm1616_vm12 }
 0x229   : > { %v1612_v32 = vsub.f32 1.0, %v1611_v53 }
 0x22b   : > { %v1613_v54 = vmul.f32 %v2355_v50, %v1612_v32 }
 0x22d   : > { %v1614_v45 = vadd.f32 %v2355_v50, %v1613_v54 }
 0x22f   : > { %v1618_v56 = vsel %vm1617_vm14, %v2355_v50, %v1614_v45 }
 0x230   : > { %v1623_v58 = vsel %vm1620_vm15, %v1622_v55, %v1618_v56 }
 0x231   : > { %1656 = vst [vmem:[%s2806_s10 + $0xf8] sm:$0xff] %v1623_v58 }
 0x232   : > { %2502 = shalt.err (!%p2499_p4)
}
 0x233   : > { %s2557_s9 = smov 128   ;;  %s2558_s10 = smov 8  }
 0x234   : > { %2158 = dma.vmem_to_hbm [thread:$0]  (%p2666_p3), %s1676_s16, 4096, %s1678_s17, %s1658_s25, %s2557_s9, %s2557_s9, %s2558_s10  }
 0x235 PF: > { %s1709_s15 = sand.u32 1, %s2537_s21   ;;  %p3337_p8 = scmp.ge.s32.totalorder %s2549_s24, 2 }
 0x236   : > { %s1710_s7 = scalar_lea.sflag [#allocation4], %s1709_s15 }
 0x237   : > { %p2174_p11 = pnand %p3337_p8, %p2629_p6 }
 0x239   : > { %p2175_p2 = pneg %p2174_p11 }
 0x23b   : > { %2528 = dma.done.wait (%p2175_p2), %s1710_s7, 4096  }
 0x23c   : > { %2530 = vsyncadd (%p2175_p2), %s1710_s7, 4294963200  ;;  %s1720_s27 = scalar_lea.sflag [#allocation10], %s1709_s15 }
 0x23d   : > { %2532 = dma.done.wait (%p2175_p2), %s1720_s27, 2048  }
 0x23e   : > { %2534 = vsyncadd (%p2175_p2), %s1720_s27, 4294965248  ;;  %p24_p3 = scmp.ge.s32.totalorder %s2656_s18, 4   ;;  %s3338_s21 = smov %s2541_s22 }
 0x23f   : > { %s3339_s22 = smov %s2545_s23  ;;  %s3340_s23 = smov %s2672_s29 }
 0x240   : > { %s3341_s24 = smov %s2656_s18  ;;  %26 = sbr.rel (!%p24_p3) target bundleno = 8 (0x8), region = 110 }
 0x245   :  { %1726 = vsyncpa [#allocation3], 1 }
 0x246   :  { %1728 = vsyncpa [#allocation3 + $0x1], 1 }
 0x247   :  { %1729 = vsyncpa [#allocation6], 1 }
 0x248   :  { %1730 = vsyncpa [#allocation4], 1 }
 0x249   :  { %1732 = vsyncpa [#allocation4 + $0x1], 1 }
 0x24a   :  { %1733 = vsyncpa [#allocation10], 1 }
 0x24b   :  { %1735 = vsyncpa [#allocation10 + $0x1], 1 }

</bundles_post_ra>
